<compile_context>
chip_gen: v7x
topology: tpu7x:2x2x1
jax: 0.10.0
libtpu: 0.0.40
codegen_flags: <defaults>
</compile_context>

<pallas_src>
import jax
import jax.numpy as jnp
from jax.experimental import pallas as pl
from jax.experimental.pallas import tpu as pltpu

_LANE = 128  # TPU lane width


def _make_kernel(channels, tile_l, l_true, l_pad, n_tiles):
    C, T = channels, tile_l

    def kernel(xc_ref, xl_ref, xr_ref, w1_ref, w1e_ref, b1_ref, w2_ref, b2_ref, o_ref):
        j = pl.program_id(1)                       # L-tile index
        x = xc_ref[...]                            # (C, T) f32
        x_bf = x.astype(jnp.bfloat16)              # single full-tile cast for conv1

        lane = jax.lax.broadcasted_iota(jnp.int32, (1, T), 1)   # time index in tile
        is_first = lane == 0                       # reused by both convs (hoisted)
        is_last = lane == T - 1

        # ---- 2-column x halos from the neighbouring 128-lane blocks; zeroed at the
        #      true sequence boundaries (PyTorch Conv1d zero padding). -> bf16
        xl = xl_ref[...]                           # (C, 128)
        xr = xr_ref[...]
        lh = jnp.where(j == 0, 0.0, xl[:, _LANE - 2:_LANE]).astype(jnp.bfloat16)
        rh = jnp.where(j == n_tiles - 1, 0.0, xr[:, 0:2]).astype(jnp.bfloat16)

        def conv3(v_bf, left_col_bf, right_col_bf, w_ref, b_ref):
            # out[:, t] = w0 @ v[:, t-1] + w1 @ v[:, t] + w2 @ v[:, t+1] + b
            # Compute the three tap products on ONE bf16 copy of v, then shift the
            # RESULTS (roll goes to the XLU slot) and patch only the boundary column
            # of each shifted product with a (C,C)x(C,1) halo dot.
            p0 = jnp.dot(w_ref[0], v_bf, preferred_element_type=jnp.float32)
            p1 = jnp.dot(w_ref[1], v_bf, preferred_element_type=jnp.float32)
            p2 = jnp.dot(w_ref[2], v_bf, preferred_element_type=jnp.float32)
            c0 = jnp.dot(w_ref[0], left_col_bf, preferred_element_type=jnp.float32)
            cT = jnp.dot(w_ref[2], right_col_bf, preferred_element_type=jnp.float32)
            left = jnp.where(is_first, c0, pltpu.roll(p0, shift=1, axis=1))
            right = jnp.where(is_last, cT, pltpu.roll(p2, shift=T - 1, axis=1))
            return p1 + left + right + b_ref[...]

        # ---- conv1 + leaky_relu over the tile ----
        h = conv3(x_bf, lh[:, 1:2], rh[:, 0:1], w1_ref, b1_ref)
        h = jnp.where(h > 0, h, 0.2 * h)
        if l_pad != l_true:
            # zero h at padded positions so conv2 sees true zero padding past L
            glob = j * T + lane
            h = jnp.where(glob < l_true, h, 0.0)

        # ---- conv1 at the two columns just outside the tile: h[-1] and h[T] ----
        # h[-1] needs x[-2], x[-1], x[0];  h[T] needs x[T-1], x[T], x[T+1].
        # Single (C,3C) x (3C,2) matmul (tap-flattened conv1 weights, wrapper-built).
        e = jnp.concatenate([
            jnp.concatenate([lh[:, 0:1], x_bf[:, T - 1:T]], axis=1),   # tap 0 inputs
            jnp.concatenate([lh[:, 1:2], rh[:, 0:1]], axis=1),         # tap 1 inputs
            jnp.concatenate([x_bf[:, 0:1], rh[:, 1:2]], axis=1),       # tap 2 inputs
        ], axis=0)                                                     # (3C, 2) bf16
        he = jnp.dot(w1e_ref[...], e, preferred_element_type=jnp.float32) + b1_ref[...]
        he = jnp.where(he > 0, he, 0.2 * he)
        # zero when the neighbour column lies outside [0, L): covers j==0 / last tile
        # and (per review) tiles whose left neighbour already sits in the L padding.
        h_left = jnp.where((j > 0) & (j * T <= l_true), he[:, 0:1], 0.0)
        h_right = jnp.where((j + 1) * T < l_true, he[:, 1:2], 0.0)

        # ---- conv2 + residual ----
        y = conv3(h.astype(jnp.bfloat16),
                  h_left.astype(jnp.bfloat16), h_right.astype(jnp.bfloat16),
                  w2_ref, b2_ref)
        o_ref[...] = (y + x).astype(o_ref.dtype)

    return kernel


def residual_block(x_ncl, w1, b1, w2, b2, *, l_tile_target=1024):
    """x_ncl: (N, C, L) like PyTorch; w*: (C_out, C_in, 3); b*: (C_out,).

    l_tile_target: ~1024 is safe on v7x (64 MiB VMEM); use 2048 on v5e/v6e.
    """
    N, C, L = x_ncl.shape

    # L tiling: lane-dense tiles (multiple of 128), tile width ~ l_tile_target.
    l_pad0 = pl.cdiv(L, _LANE) * _LANE
    n_tiles = min(max(1, pl.cdiv(l_pad0, l_tile_target)), l_pad0 // _LANE)
    T = pl.cdiv(l_pad0, n_tiles * _LANE) * _LANE
    l_pad = n_tiles * T
    bpt = T // _LANE            # 128-lane blocks per tile
    nb = l_pad // _LANE         # total 128-lane blocks along L

    x = x_ncl.astype(jnp.float32)
    if l_pad != L:
        x = jnp.pad(x, ((0, 0), (0, 0), (0, l_pad - L)))

    # weights -> (tap, C_out, C_in) bf16 ; tap-flattened (C, 3C) copy for the edge dot;
    # biases -> (C, 1) f32 (broadcast along lanes)
    w1k = jnp.transpose(w1, (2, 0, 1)).astype(jnp.bfloat16)
    w2k = jnp.transpose(w2, (2, 0, 1)).astype(jnp.bfloat16)
    w1e = jnp.concatenate([w1k[0], w1k[1], w1k[2]], axis=1)        # (C, 3C) bf16
    b1k = b1.reshape(C, 1).astype(jnp.float32)
    b2k = b2.reshape(C, 1).astype(jnp.float32)

    kernel = _make_kernel(C, T, L, l_pad, n_tiles)

    # Rough VMEM budget: double-buffered (C,T) f32 in/out + halo blocks
    # + single-buffered bf16 weights + in-kernel (C,T) temporaries.
    est = (4 * C * T * 4            # x tile in + out, double buffered, f32
           + 4 * C * _LANE * 4      # two halo blocks, double buffered
           + 3 * 3 * C * C * 2      # weights (bf16) incl. flattened copy
           + 8 * C * T * 4)         # in-kernel temporaries (x_bf, products, h, y)
    vmem_limit = int(min(100 * 2 ** 20, max(32 * 2 ** 20, int(est * 1.5))))

    def _run(single_buffer_consts):
        def cspec(shape):
            idx = lambda n, j, _nd=len(shape): (0,) * _nd
            if single_buffer_consts:
                # constant index_map -> no re-fetch; single buffer reclaims VMEM
                return pl.BlockSpec(shape, idx, pipeline_mode=pl.Buffered(1))
            return pl.BlockSpec(shape, idx)

        return pl.pallas_call(
            kernel,
            out_shape=jax.ShapeDtypeStruct((N, C, l_pad), jnp.float32),
            grid=(N, n_tiles),
            in_specs=[
                # current (C, T) activation tile
                pl.BlockSpec((None, C, T), lambda n, j: (n, 0, j)),
                # left / right 128-lane halo blocks of the same array (clamped at the
                # ends; the kernel zeroes them at the true sequence boundaries)
                pl.BlockSpec((None, C, _LANE),
                             lambda n, j: (n, 0, jnp.maximum(j * bpt - 1, 0))),
                pl.BlockSpec((None, C, _LANE),
                             lambda n, j: (n, 0, jnp.minimum((j + 1) * bpt, nb - 1))),
                cspec((3, C, C)),        # conv1 weights (bf16)
                cspec((C, 3 * C)),       # conv1 weights, tap-flattened (edge dot)
                cspec((C, 1)),           # conv1 bias
                cspec((3, C, C)),        # conv2 weights (bf16)
                cspec((C, 1)),           # conv2 bias
            ],
            out_specs=pl.BlockSpec((None, C, T), lambda n, j: (n, 0, j)),
            compiler_params=pltpu.CompilerParams(
                dimension_semantics=("parallel", "parallel"),
                vmem_limit_bytes=vmem_limit),
        )(x, x, x, w1k, w1e, b1k, w2k, b2k)

    try:
        out = _run(True)
    except Exception:
        # pipeline_mode=pl.Buffered(1) unsupported on this JAX version -> default specs
        out = _run(False)

    if l_pad != L:
        out = out[:, :, :L]
    return out


def _reference(x_ncl, w1, b1, w2, b2):
    """Pure-JAX f32 reference matching PyTorch Conv1d semantics (NCL, OIH)."""
    dn = ("NCH", "OIH", "NCH")
    h = jax.lax.conv_general_dilated(x_ncl, w1, (1,), ((1, 1),),
                                     dimension_numbers=dn) + b1[None, :, None]
    h = jnp.where(h > 0, h, 0.2 * h)
    y = jax.lax.conv_general_dilated(h, w2, (1,), ((1, 1),),
                                     dimension_numbers=dn) + b2[None, :, None]
    return y + x_ncl


if __name__ == "__main__":
    key = jax.random.PRNGKey(0)

    def run_case(N, C, L, l_tile_target, case_key):
        kx, k1, kb1, k2, kb2 = jax.random.split(case_key, 5)
        x = jax.random.normal(kx, (N, C, L), dtype=jnp.float32)
        w1 = 0.1 * jax.random.normal(k1, (C, C, 3), dtype=jnp.float32)
        b1 = 0.1 * jax.random.normal(kb1, (C,), dtype=jnp.float32)
        w2 = 0.1 * jax.random.normal(k2, (C, C, 3), dtype=jnp.float32)
        b2 = 0.1 * jax.random.normal(kb2, (C,), dtype=jnp.float32)

        out = jax.block_until_ready(
            residual_block(x, w1, b1, w2, b2, l_tile_target=l_tile_target))
        ref = jax.block_until_ready(_reference(x, w1, b1, w2, b2))

        assert out.shape == (N, C, L)
        # bf16 MXU operands (f32 accumulation) -> tolerance looser than a pure-f32 path
        err = float(jnp.max(jnp.abs(out - ref)))
        assert jnp.allclose(out, ref, atol=5e-2, rtol=5e-2), \
            f"mismatch vs reference (max abs err {err})"

    ka, kb = jax.random.split(key)
    # small shape from the spec (single L tile; 16 lanes padded to one 128-lane tile)
    run_case(N=2, C=4, L=16, l_tile_target=1024, case_key=ka)
    # exercise the multi-tile halo + padding path (L=300 -> 3 tiles of 128 lanes)
    run_case(N=1, C=8, L=300, l_tile_target=128, case_key=kb)

    print("KERNEL_OK")
</pallas_src>

<mosaic_0001>
module attributes {stable_mosaic.version = 11 : i64} {
  func.func @kernel(%arg0: i32, %arg1: i32, %arg2: memref<1x4x128xf32, #tpu.memory_space<vmem>>, %arg3: memref<1x4x128xf32, #tpu.memory_space<vmem>>, %arg4: memref<1x4x128xf32, #tpu.memory_space<vmem>>, %arg5: memref<3x4x4xbf16, #tpu.memory_space<vmem>>, %arg6: memref<4x12xbf16, #tpu.memory_space<vmem>>, %arg7: memref<4x1xf32, #tpu.memory_space<vmem>>, %arg8: memref<3x4x4xbf16, #tpu.memory_space<vmem>>, %arg9: memref<4x1xf32, #tpu.memory_space<vmem>>, %arg10: memref<1x4x128xf32, #tpu.memory_space<vmem>>) attributes {dimension_semantics = [#tpu.dimension_semantics<parallel>, #tpu.dimension_semantics<parallel>], iteration_bounds = array<i64: 2, 1>, scalar_prefetch = 0 : i64, scratch_operands = 0 : i64, tpu.core_type = #tpu.core_type<tc>, window_params = [{transform_indices = @transform_0, window_bounds = array<i64: 1, 4, 128>}, {transform_indices = @transform_1, window_bounds = array<i64: 1, 4, 128>}, {transform_indices = @transform_2, window_bounds = array<i64: 1, 4, 128>}, {pipeline_mode = #tpu.pipeline_mode<synchronous>, transform_indices = @transform_3, window_bounds = array<i64: 3, 4, 4>}, {pipeline_mode = #tpu.pipeline_mode<synchronous>, transform_indices = @transform_4, window_bounds = array<i64: 4, 12>}, {pipeline_mode = #tpu.pipeline_mode<synchronous>, transform_indices = @transform_5, window_bounds = array<i64: 4, 1>}, {pipeline_mode = #tpu.pipeline_mode<synchronous>, transform_indices = @transform_6, window_bounds = array<i64: 3, 4, 4>}, {pipeline_mode = #tpu.pipeline_mode<synchronous>, transform_indices = @transform_7, window_bounds = array<i64: 4, 1>}, {transform_indices = @transform_8, window_bounds = array<i64: 1, 4, 128>}]} {
    %c0 = arith.constant 0 : index
    %c0_0 = arith.constant 0 : index
    %c0_1 = arith.constant 0 : index
    %0 = vector.load %arg2[%c0, %c0_0, %c0_1] : memref<1x4x128xf32, #tpu.memory_space<vmem>>, vector<1x4x128xf32>
    %1 = vector.shape_cast %0 : vector<1x4x128xf32> to vector<4x128xf32>
    %2 = arith.truncf %1 : vector<4x128xf32> to vector<4x128xbf16>
    %3 = tpu.iota {dimensions = array<i32: 1>} : vector<1x128xi32>
    %c0_i32 = arith.constant 0 : i32
    %4 = vector.broadcast %c0_i32 : i32 to vector<1x128xi32>
    %5 = arith.cmpi eq, %3, %4 : vector<1x128xi32>
    %c127_i32 = arith.constant 127 : i32
    %6 = vector.broadcast %c127_i32 : i32 to vector<1x128xi32>
    %7 = arith.cmpi eq, %3, %6 : vector<1x128xi32>
    %c0_2 = arith.constant 0 : index
    %c0_3 = arith.constant 0 : index
    %c0_4 = arith.constant 0 : index
    %8 = vector.load %arg3[%c0_2, %c0_3, %c0_4] : memref<1x4x128xf32, #tpu.memory_space<vmem>>, vector<1x4x128xf32>
    %9 = vector.shape_cast %8 : vector<1x4x128xf32> to vector<4x128xf32>
    %c0_5 = arith.constant 0 : index
    %c0_6 = arith.constant 0 : index
    %c0_7 = arith.constant 0 : index
    %10 = vector.load %arg4[%c0_5, %c0_6, %c0_7] : memref<1x4x128xf32, #tpu.memory_space<vmem>>, vector<1x4x128xf32>
    %11 = vector.shape_cast %10 : vector<1x4x128xf32> to vector<4x128xf32>
    %c0_i32_8 = arith.constant 0 : i32
    %12 = arith.cmpi eq, %arg1, %c0_i32_8 : i32
    %13 = vector.extract_strided_slice %9 {offsets = [0, 126], sizes = [4, 2], strides = [1, 1]} : vector<4x128xf32> to vector<4x2xf32>
    %cst = arith.constant 0.000000e+00 : f32
    %14 = vector.broadcast %cst : f32 to vector<4x2xf32>
    %15 = arith.select %12, %14, %13 : vector<4x2xf32>
    %16 = arith.truncf %15 : vector<4x2xf32> to vector<4x2xbf16>
    %c0_i32_9 = arith.constant 0 : i32
    %17 = arith.cmpi eq, %arg1, %c0_i32_9 : i32
    %18 = vector.extract_strided_slice %11 {offsets = [0, 0], sizes = [4, 2], strides = [1, 1]} : vector<4x128xf32> to vector<4x2xf32>
    %cst_10 = arith.constant 0.000000e+00 : f32
    %19 = vector.broadcast %cst_10 : f32 to vector<4x2xf32>
    %20 = arith.select %17, %19, %18 : vector<4x2xf32>
    %21 = arith.truncf %20 : vector<4x2xf32> to vector<4x2xbf16>
    %22 = vector.extract_strided_slice %16 {offsets = [0, 1], sizes = [4, 1], strides = [1, 1]} : vector<4x2xbf16> to vector<4x1xbf16>
    %23 = vector.extract_strided_slice %21 {offsets = [0, 0], sizes = [4, 1], strides = [1, 1]} : vector<4x2xbf16> to vector<4x1xbf16>
    %c0_11 = arith.constant 0 : index
    %c0_12 = arith.constant 0 : index
    %c0_13 = arith.constant 0 : index
    %24 = vector.load %arg5[%c0_11, %c0_12, %c0_13] : memref<3x4x4xbf16, #tpu.memory_space<vmem>>, vector<1x4x4xbf16>
    %25 = vector.shape_cast %24 : vector<1x4x4xbf16> to vector<4x4xbf16>
    %cst_14 = arith.constant dense<0.000000e+00> : vector<4x128xf32>
    %26 = tpu.matmul %25, %2, %cst_14 {dimension_numbers = #tpu.dot_dimension_numbers<[1], [0], [0], [1], [0, 0, 1, 1], [], []>} : vector<4x4xbf16>, vector<4x128xbf16>, vector<4x128xf32> -> vector<4x128xf32>
    %c1 = arith.constant 1 : index
    %c0_15 = arith.constant 0 : index
    %c0_16 = arith.constant 0 : index
    %27 = vector.load %arg5[%c1, %c0_15, %c0_16] : memref<3x4x4xbf16, #tpu.memory_space<vmem>>, vector<1x4x4xbf16>
    %28 = vector.shape_cast %27 : vector<1x4x4xbf16> to vector<4x4xbf16>
    %cst_17 = arith.constant dense<0.000000e+00> : vector<4x128xf32>
    %29 = tpu.matmul %28, %2, %cst_17 {dimension_numbers = #tpu.dot_dimension_numbers<[1], [0], [0], [1], [0, 0, 1, 1], [], []>} : vector<4x4xbf16>, vector<4x128xbf16>, vector<4x128xf32> -> vector<4x128xf32>
    %c2 = arith.constant 2 : index
    %c0_18 = arith.constant 0 : index
    %c0_19 = arith.constant 0 : index
    %30 = vector.load %arg5[%c2, %c0_18, %c0_19] : memref<3x4x4xbf16, #tpu.memory_space<vmem>>, vector<1x4x4xbf16>
    %31 = vector.shape_cast %30 : vector<1x4x4xbf16> to vector<4x4xbf16>
    %cst_20 = arith.constant dense<0.000000e+00> : vector<4x128xf32>
    %32 = tpu.matmul %31, %2, %cst_20 {dimension_numbers = #tpu.dot_dimension_numbers<[1], [0], [0], [1], [0, 0, 1, 1], [], []>} : vector<4x4xbf16>, vector<4x128xbf16>, vector<4x128xf32> -> vector<4x128xf32>
    %c0_21 = arith.constant 0 : index
    %c0_22 = arith.constant 0 : index
    %c0_23 = arith.constant 0 : index
    %33 = vector.load %arg5[%c0_21, %c0_22, %c0_23] : memref<3x4x4xbf16, #tpu.memory_space<vmem>>, vector<1x4x4xbf16>
    %34 = vector.shape_cast %33 : vector<1x4x4xbf16> to vector<4x4xbf16>
    %cst_24 = arith.constant dense<0.000000e+00> : vector<4x1xf32>
    %35 = tpu.matmul %34, %22, %cst_24 {dimension_numbers = #tpu.dot_dimension_numbers<[1], [0], [0], [1], [0, 0, 1, 1], [], []>} : vector<4x4xbf16>, vector<4x1xbf16>, vector<4x1xf32> -> vector<4x1xf32>
    %c2_25 = arith.constant 2 : index
    %c0_26 = arith.constant 0 : index
    %c0_27 = arith.constant 0 : index
    %36 = vector.load %arg5[%c2_25, %c0_26, %c0_27] : memref<3x4x4xbf16, #tpu.memory_space<vmem>>, vector<1x4x4xbf16>
    %37 = vector.shape_cast %36 : vector<1x4x4xbf16> to vector<4x4xbf16>
    %cst_28 = arith.constant dense<0.000000e+00> : vector<4x1xf32>
    %38 = tpu.matmul %37, %23, %cst_28 {dimension_numbers = #tpu.dot_dimension_numbers<[1], [0], [0], [1], [0, 0, 1, 1], [], []>} : vector<4x4xbf16>, vector<4x1xbf16>, vector<4x1xf32> -> vector<4x1xf32>
    %c1_i32 = arith.constant 1 : i32
    %39 = tpu.dynamic_rotate %26 by %c1_i32 dim 1 : vector<4x128xf32>, i32 -> vector<4x128xf32>
    %40 = vector.shape_cast %5 : vector<1x128xi1> to vector<1x128xi1>
    %41 = vector.broadcast %40 : vector<1x128xi1> to vector<4x128xi1>
    %42 = vector.shape_cast %35 : vector<4x1xf32> to vector<4x1xf32>
    %43 = vector.broadcast %42 : vector<4x1xf32> to vector<4x128xf32>
    %44 = arith.select %41, %43, %39 : vector<4x128xi1>, vector<4x128xf32>
    %c127_i32_29 = arith.constant 127 : i32
    %45 = tpu.dynamic_rotate %32 by %c127_i32_29 dim 1 : vector<4x128xf32>, i32 -> vector<4x128xf32>
    %46 = vector.shape_cast %7 : vector<1x128xi1> to vector<1x128xi1>
    %47 = vector.broadcast %46 : vector<1x128xi1> to vector<4x128xi1>
    %48 = vector.shape_cast %38 : vector<4x1xf32> to vector<4x1xf32>
    %49 = vector.broadcast %48 : vector<4x1xf32> to vector<4x128xf32>
    %50 = arith.select %47, %49, %45 : vector<4x128xi1>, vector<4x128xf32>
    %51 = arith.addf %29, %44 : vector<4x128xf32>
    %52 = arith.addf %51, %50 : vector<4x128xf32>
    %c0_30 = arith.constant 0 : index
    %c0_31 = arith.constant 0 : index
    %53 = vector.load %arg7[%c0_30, %c0_31] : memref<4x1xf32, #tpu.memory_space<vmem>>, vector<4x1xf32>
    %54 = vector.broadcast %53 : vector<4x1xf32> to vector<4x128xf32>
    %55 = arith.addf %52, %54 : vector<4x128xf32>
    %cst_32 = arith.constant 0.000000e+00 : f32
    %56 = vector.broadcast %cst_32 : f32 to vector<4x128xf32>
    %57 = arith.cmpf ogt, %55, %56 : vector<4x128xf32>
    %cst_33 = arith.constant 2.000000e-01 : f32
    %58 = vector.broadcast %cst_33 : f32 to vector<4x128xf32>
    %59 = arith.mulf %58, %55 : vector<4x128xf32>
    %60 = arith.select %57, %55, %59 : vector<4x128xi1>, vector<4x128xf32>
    %c128_i32 = arith.constant 128 : i32
    %61 = arith.muli %arg1, %c128_i32 : i32
    %62 = vector.broadcast %61 : i32 to vector<1x128xi32>
    %63 = arith.addi %62, %3 : vector<1x128xi32>
    %c16_i32 = arith.constant 16 : i32
    %64 = vector.broadcast %c16_i32 : i32 to vector<1x128xi32>
    %65 = arith.cmpi slt, %63, %64 : vector<1x128xi32>
    %cst_34 = arith.constant 0.000000e+00 : f32
    %66 = vector.shape_cast %65 : vector<1x128xi1> to vector<1x128xi1>
    %67 = vector.broadcast %66 : vector<1x128xi1> to vector<4x128xi1>
    %68 = vector.broadcast %cst_34 : f32 to vector<4x128xf32>
    %69 = arith.select %67, %60, %68 : vector<4x128xi1>, vector<4x128xf32>
    %70 = vector.extract_strided_slice %16 {offsets = [0, 0], sizes = [4, 1], strides = [1, 1]} : vector<4x2xbf16> to vector<4x1xbf16>
    %71 = vector.extract_strided_slice %2 {offsets = [0, 127], sizes = [4, 1], strides = [1, 1]} : vector<4x128xbf16> to vector<4x1xbf16>
    %72 = tpu.concatenate %70, %71 in 1 : vector<4x1xbf16>, vector<4x1xbf16> -> vector<4x2xbf16>
    %73 = vector.extract_strided_slice %16 {offsets = [0, 1], sizes = [4, 1], strides = [1, 1]} : vector<4x2xbf16> to vector<4x1xbf16>
    %74 = vector.extract_strided_slice %21 {offsets = [0, 0], sizes = [4, 1], strides = [1, 1]} : vector<4x2xbf16> to vector<4x1xbf16>
    %75 = tpu.concatenate %73, %74 in 1 : vector<4x1xbf16>, vector<4x1xbf16> -> vector<4x2xbf16>
    %76 = vector.extract_strided_slice %2 {offsets = [0, 0], sizes = [4, 1], strides = [1, 1]} : vector<4x128xbf16> to vector<4x1xbf16>
    %77 = vector.extract_strided_slice %21 {offsets = [0, 1], sizes = [4, 1], strides = [1, 1]} : vector<4x2xbf16> to vector<4x1xbf16>
    %78 = tpu.concatenate %76, %77 in 1 : vector<4x1xbf16>, vector<4x1xbf16> -> vector<4x2xbf16>
    %79 = tpu.concatenate %72, %75, %78 in 0 : vector<4x2xbf16>, vector<4x2xbf16>, vector<4x2xbf16> -> vector<12x2xbf16>
    %c0_35 = arith.constant 0 : index
    %c0_36 = arith.constant 0 : index
    %80 = vector.load %arg6[%c0_35, %c0_36] : memref<4x12xbf16, #tpu.memory_space<vmem>>, vector<4x12xbf16>
    %cst_37 = arith.constant dense<0.000000e+00> : vector<4x2xf32>
    %81 = tpu.matmul %80, %79, %cst_37 {dimension_numbers = #tpu.dot_dimension_numbers<[1], [0], [0], [1], [0, 0, 1, 1], [], []>} : vector<4x12xbf16>, vector<12x2xbf16>, vector<4x2xf32> -> vector<4x2xf32>
    %c0_38 = arith.constant 0 : index
    %c0_39 = arith.constant 0 : index
    %82 = vector.load %arg7[%c0_38, %c0_39] : memref<4x1xf32, #tpu.memory_space<vmem>>, vector<4x1xf32>
    %83 = vector.broadcast %82 : vector<4x1xf32> to vector<4x2xf32>
    %84 = arith.addf %81, %83 : vector<4x2xf32>
    %cst_40 = arith.constant 0.000000e+00 : f32
    %85 = vector.broadcast %cst_40 : f32 to vector<4x2xf32>
    %86 = arith.cmpf ogt, %84, %85 : vector<4x2xf32>
    %cst_41 = arith.constant 2.000000e-01 : f32
    %87 = vector.broadcast %cst_41 : f32 to vector<4x2xf32>
    %88 = arith.mulf %87, %84 : vector<4x2xf32>
    %89 = arith.select %86, %84, %88 : vector<4x2xi1>, vector<4x2xf32>
    %c0_i32_42 = arith.constant 0 : i32
    %90 = arith.cmpi sgt, %arg1, %c0_i32_42 : i32
    %c128_i32_43 = arith.constant 128 : i32
    %91 = arith.muli %arg1, %c128_i32_43 : i32
    %c16_i32_44 = arith.constant 16 : i32
    %92 = arith.cmpi sle, %91, %c16_i32_44 : i32
    %93 = arith.andi %90, %92 : i1
    %94 = vector.extract_strided_slice %89 {offsets = [0, 0], sizes = [4, 1], strides = [1, 1]} : vector<4x2xf32> to vector<4x1xf32>
    %cst_45 = arith.constant 0.000000e+00 : f32
    %95 = vector.broadcast %cst_45 : f32 to vector<4x1xf32>
    %96 = arith.select %93, %94, %95 : vector<4x1xf32>
    %c1_i32_46 = arith.constant 1 : i32
    %97 = arith.addi %arg1, %c1_i32_46 : i32
    %c128_i32_47 = arith.constant 128 : i32
    %98 = arith.muli %97, %c128_i32_47 : i32
    %c16_i32_48 = arith.constant 16 : i32
    %99 = arith.cmpi slt, %98, %c16_i32_48 : i32
    %100 = vector.extract_strided_slice %89 {offsets = [0, 1], sizes = [4, 1], strides = [1, 1]} : vector<4x2xf32> to vector<4x1xf32>
    %cst_49 = arith.constant 0.000000e+00 : f32
    %101 = vector.broadcast %cst_49 : f32 to vector<4x1xf32>
    %102 = arith.select %99, %100, %101 : vector<4x1xf32>
    %103 = arith.truncf %69 : vector<4x128xf32> to vector<4x128xbf16>
    %104 = arith.truncf %96 : vector<4x1xf32> to vector<4x1xbf16>
    %105 = arith.truncf %102 : vector<4x1xf32> to vector<4x1xbf16>
    %c0_50 = arith.constant 0 : index
    %c0_51 = arith.constant 0 : index
    %c0_52 = arith.constant 0 : index
    %106 = vector.load %arg8[%c0_50, %c0_51, %c0_52] : memref<3x4x4xbf16, #tpu.memory_space<vmem>>, vector<1x4x4xbf16>
    %107 = vector.shape_cast %106 : vector<1x4x4xbf16> to vector<4x4xbf16>
    %cst_53 = arith.constant dense<0.000000e+00> : vector<4x128xf32>
    %108 = tpu.matmul %107, %103, %cst_53 {dimension_numbers = #tpu.dot_dimension_numbers<[1], [0], [0], [1], [0, 0, 1, 1], [], []>} : vector<4x4xbf16>, vector<4x128xbf16>, vector<4x128xf32> -> vector<4x128xf32>
    %c1_54 = arith.constant 1 : index
    %c0_55 = arith.constant 0 : index
    %c0_56 = arith.constant 0 : index
    %109 = vector.load %arg8[%c1_54, %c0_55, %c0_56] : memref<3x4x4xbf16, #tpu.memory_space<vmem>>, vector<1x4x4xbf16>
    %110 = vector.shape_cast %109 : vector<1x4x4xbf16> to vector<4x4xbf16>
    %cst_57 = arith.constant dense<0.000000e+00> : vector<4x128xf32>
    %111 = tpu.matmul %110, %103, %cst_57 {dimension_numbers = #tpu.dot_dimension_numbers<[1], [0], [0], [1], [0, 0, 1, 1], [], []>} : vector<4x4xbf16>, vector<4x128xbf16>, vector<4x128xf32> -> vector<4x128xf32>
    %c2_58 = arith.constant 2 : index
    %c0_59 = arith.constant 0 : index
    %c0_60 = arith.constant 0 : index
    %112 = vector.load %arg8[%c2_58, %c0_59, %c0_60] : memref<3x4x4xbf16, #tpu.memory_space<vmem>>, vector<1x4x4xbf16>
    %113 = vector.shape_cast %112 : vector<1x4x4xbf16> to vector<4x4xbf16>
    %cst_61 = arith.constant dense<0.000000e+00> : vector<4x128xf32>
    %114 = tpu.matmul %113, %103, %cst_61 {dimension_numbers = #tpu.dot_dimension_numbers<[1], [0], [0], [1], [0, 0, 1, 1], [], []>} : vector<4x4xbf16>, vector<4x128xbf16>, vector<4x128xf32> -> vector<4x128xf32>
    %c0_62 = arith.constant 0 : index
    %c0_63 = arith.constant 0 : index
    %c0_64 = arith.constant 0 : index
    %115 = vector.load %arg8[%c0_62, %c0_63, %c0_64] : memref<3x4x4xbf16, #tpu.memory_space<vmem>>, vector<1x4x4xbf16>
    %116 = vector.shape_cast %115 : vector<1x4x4xbf16> to vector<4x4xbf16>
    %cst_65 = arith.constant dense<0.000000e+00> : vector<4x1xf32>
    %117 = tpu.matmul %116, %104, %cst_65 {dimension_numbers = #tpu.dot_dimension_numbers<[1], [0], [0], [1], [0, 0, 1, 1], [], []>} : vector<4x4xbf16>, vector<4x1xbf16>, vector<4x1xf32> -> vector<4x1xf32>
    %c2_66 = arith.constant 2 : index
    %c0_67 = arith.constant 0 : index
    %c0_68 = arith.constant 0 : index
    %118 = vector.load %arg8[%c2_66, %c0_67, %c0_68] : memref<3x4x4xbf16, #tpu.memory_space<vmem>>, vector<1x4x4xbf16>
    %119 = vector.shape_cast %118 : vector<1x4x4xbf16> to vector<4x4xbf16>
    %cst_69 = arith.constant dense<0.000000e+00> : vector<4x1xf32>
    %120 = tpu.matmul %119, %105, %cst_69 {dimension_numbers = #tpu.dot_dimension_numbers<[1], [0], [0], [1], [0, 0, 1, 1], [], []>} : vector<4x4xbf16>, vector<4x1xbf16>, vector<4x1xf32> -> vector<4x1xf32>
    %c1_i32_70 = arith.constant 1 : i32
    %121 = tpu.dynamic_rotate %108 by %c1_i32_70 dim 1 : vector<4x128xf32>, i32 -> vector<4x128xf32>
    %122 = vector.shape_cast %5 : vector<1x128xi1> to vector<1x128xi1>
    %123 = vector.broadcast %122 : vector<1x128xi1> to vector<4x128xi1>
    %124 = vector.shape_cast %117 : vector<4x1xf32> to vector<4x1xf32>
    %125 = vector.broadcast %124 : vector<4x1xf32> to vector<4x128xf32>
    %126 = arith.select %123, %125, %121 : vector<4x128xi1>, vector<4x128xf32>
    %c127_i32_71 = arith.constant 127 : i32
    %127 = tpu.dynamic_rotate %114 by %c127_i32_71 dim 1 : vector<4x128xf32>, i32 -> vector<4x128xf32>
    %128 = vector.shape_cast %7 : vector<1x128xi1> to vector<1x128xi1>
    %129 = vector.broadcast %128 : vector<1x128xi1> to vector<4x128xi1>
    %130 = vector.shape_cast %120 : vector<4x1xf32> to vector<4x1xf32>
    %131 = vector.broadcast %130 : vector<4x1xf32> to vector<4x128xf32>
    %132 = arith.select %129, %131, %127 : vector<4x128xi1>, vector<4x128xf32>
    %133 = arith.addf %111, %126 : vector<4x128xf32>
    %134 = arith.addf %133, %132 : vector<4x128xf32>
    %c0_72 = arith.constant 0 : index
    %c0_73 = arith.constant 0 : index
    %135 = vector.load %arg9[%c0_72, %c0_73] : memref<4x1xf32, #tpu.memory_space<vmem>>, vector<4x1xf32>
    %136 = vector.broadcast %135 : vector<4x1xf32> to vector<4x128xf32>
    %137 = arith.addf %134, %136 : vector<4x128xf32>
    %138 = arith.addf %137, %1 : vector<4x128xf32>
    %c0_74 = arith.constant 0 : index
    %c0_75 = arith.constant 0 : index
    %c0_76 = arith.constant 0 : index
    %139 = vector.load %arg10[%c0_74, %c0_75, %c0_76] : memref<1x4x128xf32, #tpu.memory_space<vmem>>, vector<1x4x128xf32>
    %140 = vector.shape_cast %139 : vector<1x4x128xf32> to vector<4x128xf32>
    %141 = vector.shape_cast %138 : vector<4x128xf32> to vector<1x4x128xf32>
    tpu.vector_store %arg10[%c0_74, %c0_75, %c0_76], %141 {strides = array<i32>} : memref<1x4x128xf32, #tpu.memory_space<vmem>>, vector<1x4x128xf32>,
    return
  }
  func.func @transform_0(%arg0: i32, %arg1: i32) -> (i32, i32, i32) {
    %c0_i32 = arith.constant 0 : i32
    %c0_i32_0 = arith.constant 0 : i32
    return %arg0, %c0_i32, %arg1 : i32, i32, i32
  }
  func.func @transform_1(%arg0: i32, %arg1: i32) -> (i32, i32, i32) {
    %c1_i32 = arith.constant 1 : i32
    %0 = arith.muli %arg1, %c1_i32 : i32
    %c1_i32_0 = arith.constant 1 : i32
    %1 = arith.subi %0, %c1_i32_0 : i32
    %c0_i32 = arith.constant 0 : i32
    %2 = arith.maxsi %1, %c0_i32 : i32
    %c0_i32_1 = arith.constant 0 : i32
    %c0_i32_2 = arith.constant 0 : i32
    return %arg0, %c0_i32_1, %2 : i32, i32, i32
  }
  func.func @transform_2(%arg0: i32, %arg1: i32) -> (i32, i32, i32) {
    %c1_i32 = arith.constant 1 : i32
    %0 = arith.addi %arg1, %c1_i32 : i32
    %c1_i32_0 = arith.constant 1 : i32
    %1 = arith.muli %0, %c1_i32_0 : i32
    %c0_i32 = arith.constant 0 : i32
    %2 = arith.minsi %1, %c0_i32 : i32
    %c0_i32_1 = arith.constant 0 : i32
    %c0_i32_2 = arith.constant 0 : i32
    return %arg0, %c0_i32_1, %2 : i32, i32, i32
  }
  func.func @transform_3(%arg0: i32, %arg1: i32) -> (i32, i32, i32) {
    %c0_i32 = arith.constant 0 : i32
    %c0_i32_0 = arith.constant 0 : i32
    %c0_i32_1 = arith.constant 0 : i32
    %c0_i32_2 = arith.constant 0 : i32
    return %c0_i32, %c0_i32_0, %c0_i32_1 : i32, i32, i32
  }
  func.func @transform_4(%arg0: i32, %arg1: i32) -> (i32, i32) {
    %c0_i32 = arith.constant 0 : i32
    %c0_i32_0 = arith.constant 0 : i32
    %c0_i32_1 = arith.constant 0 : i32
    return %c0_i32, %c0_i32_0 : i32, i32
  }
  func.func @transform_5(%arg0: i32, %arg1: i32) -> (i32, i32) {
    %c0_i32 = arith.constant 0 : i32
    %c0_i32_0 = arith.constant 0 : i32
    %c0_i32_1 = arith.constant 0 : i32
    return %c0_i32, %c0_i32_0 : i32, i32
  }
  func.func @transform_6(%arg0: i32, %arg1: i32) -> (i32, i32, i32) {
    %c0_i32 = arith.constant 0 : i32
    %c0_i32_0 = arith.constant 0 : i32
    %c0_i32_1 = arith.constant 0 : i32
    %c0_i32_2 = arith.constant 0 : i32
    return %c0_i32, %c0_i32_0, %c0_i32_1 : i32, i32, i32
  }
  func.func @transform_7(%arg0: i32, %arg1: i32) -> (i32, i32) {
    %c0_i32 = arith.constant 0 : i32
    %c0_i32_0 = arith.constant 0 : i32
    %c0_i32_1 = arith.constant 0 : i32
    return %c0_i32, %c0_i32_0 : i32, i32
  }
  func.func @transform_8(%arg0: i32, %arg1: i32) -> (i32, i32, i32) {
    %c0_i32 = arith.constant 0 : i32
    %c0_i32_0 = arith.constant 0 : i32
    return %arg0, %c0_i32, %arg1 : i32, i32, i32
  }
}

module attributes {stable_mosaic.version = 11 : i64} {
  func.func @kernel(%arg0: i32, %arg1: i32, %arg2: memref<1x4x128xf32, #tpu.memory_space<vmem>>, %arg3: memref<1x4x128xf32, #tpu.memory_space<vmem>>, %arg4: memref<1x4x128xf32, #tpu.memory_space<vmem>>, %arg5: memref<3x4x4xbf16, #tpu.memory_space<vmem>>, %arg6: memref<4x12xbf16, #tpu.memory_space<vmem>>, %arg7: memref<4x1xf32, #tpu.memory_space<vmem>>, %arg8: memref<3x4x4xbf16, #tpu.memory_space<vmem>>, %arg9: memref<4x1xf32, #tpu.memory_space<vmem>>, %arg10: memref<1x4x128xf32, #tpu.memory_space<vmem>>) attributes {dimension_semantics = [#tpu.dimension_semantics<parallel>, #tpu.dimension_semantics<parallel>], iteration_bounds = array<i64: 2, 1>, scalar_prefetch = 0 : i64, scratch_operands = 0 : i64, tpu.core_type = #tpu.core_type<tc>, window_params = [{transform_indices = @transform_0, window_bounds = array<i64: 1, 4, 128>}, {transform_indices = @transform_1, window_bounds = array<i64: 1, 4, 128>}, {transform_indices = @transform_2, window_bounds = array<i64: 1, 4, 128>}, {pipeline_mode = #tpu.pipeline_mode<synchronous>, transform_indices = @transform_3, window_bounds = array<i64: 3, 4, 4>}, {pipeline_mode = #tpu.pipeline_mode<synchronous>, transform_indices = @transform_4, window_bounds = array<i64: 4, 12>}, {pipeline_mode = #tpu.pipeline_mode<synchronous>, transform_indices = @transform_5, window_bounds = array<i64: 4, 1>}, {pipeline_mode = #tpu.pipeline_mode<synchronous>, transform_indices = @transform_6, window_bounds = array<i64: 3, 4, 4>}, {pipeline_mode = #tpu.pipeline_mode<synchronous>, transform_indices = @transform_7, window_bounds = array<i64: 4, 1>}, {transform_indices = @transform_8, window_bounds = array<i64: 1, 4, 128>}]} {
    %c0 = arith.constant 0 : index
    %c0_0 = arith.constant 0 : index
    %c0_1 = arith.constant 0 : index
    %0 = vector.load %arg2[%c0, %c0_0, %c0_1] : memref<1x4x128xf32, #tpu.memory_space<vmem>>, vector<1x4x128xf32>
    %1 = vector.shape_cast %0 : vector<1x4x128xf32> to vector<4x128xf32>
    %2 = arith.truncf %1 : vector<4x128xf32> to vector<4x128xbf16>
    %3 = tpu.iota {dimensions = array<i32: 1>} : vector<1x128xi32>
    %c0_i32 = arith.constant 0 : i32
    %4 = vector.broadcast %c0_i32 : i32 to vector<1x128xi32>
    %5 = arith.cmpi eq, %3, %4 : vector<1x128xi32>
    %c127_i32 = arith.constant 127 : i32
    %6 = vector.broadcast %c127_i32 : i32 to vector<1x128xi32>
    %7 = arith.cmpi eq, %3, %6 : vector<1x128xi32>
    %c0_2 = arith.constant 0 : index
    %c0_3 = arith.constant 0 : index
    %c0_4 = arith.constant 0 : index
    %8 = vector.load %arg3[%c0_2, %c0_3, %c0_4] : memref<1x4x128xf32, #tpu.memory_space<vmem>>, vector<1x4x128xf32>
    %9 = vector.shape_cast %8 : vector<1x4x128xf32> to vector<4x128xf32>
    %c0_5 = arith.constant 0 : index
    %c0_6 = arith.constant 0 : index
    %c0_7 = arith.constant 0 : index
    %10 = vector.load %arg4[%c0_5, %c0_6, %c0_7] : memref<1x4x128xf32, #tpu.memory_space<vmem>>, vector<1x4x128xf32>
    %11 = vector.shape_cast %10 : vector<1x4x128xf32> to vector<4x128xf32>
    %c0_i32_8 = arith.constant 0 : i32
    %12 = arith.cmpi eq, %arg1, %c0_i32_8 : i32
    %13 = vector.extract_strided_slice %9 {offsets = [0, 126], sizes = [4, 2], strides = [1, 1]} : vector<4x128xf32> to vector<4x2xf32>
    %cst = arith.constant 0.000000e+00 : f32
    %14 = vector.broadcast %cst : f32 to vector<4x2xf32>
    %15 = arith.select %12, %14, %13 : vector<4x2xf32>
    %16 = arith.truncf %15 : vector<4x2xf32> to vector<4x2xbf16>
    %c0_i32_9 = arith.constant 0 : i32
    %17 = arith.cmpi eq, %arg1, %c0_i32_9 : i32
    %18 = vector.extract_strided_slice %11 {offsets = [0, 0], sizes = [4, 2], strides = [1, 1]} : vector<4x128xf32> to vector<4x2xf32>
    %cst_10 = arith.constant 0.000000e+00 : f32
    %19 = vector.broadcast %cst_10 : f32 to vector<4x2xf32>
    %20 = arith.select %17, %19, %18 : vector<4x2xf32>
    %21 = arith.truncf %20 : vector<4x2xf32> to vector<4x2xbf16>
    %22 = vector.extract_strided_slice %16 {offsets = [0, 1], sizes = [4, 1], strides = [1, 1]} : vector<4x2xbf16> to vector<4x1xbf16>
    %23 = vector.extract_strided_slice %21 {offsets = [0, 0], sizes = [4, 1], strides = [1, 1]} : vector<4x2xbf16> to vector<4x1xbf16>
    %c0_11 = arith.constant 0 : index
    %c0_12 = arith.constant 0 : index
    %c0_13 = arith.constant 0 : index
    %24 = vector.load %arg5[%c0_11, %c0_12, %c0_13] : memref<3x4x4xbf16, #tpu.memory_space<vmem>>, vector<1x4x4xbf16>
    %25 = vector.shape_cast %24 : vector<1x4x4xbf16> to vector<4x4xbf16>
    %cst_14 = arith.constant dense<0.000000e+00> : vector<4x128xf32>
    %26 = tpu.matmul %25, %2, %cst_14 {dimension_numbers = #tpu.dot_dimension_numbers<[1], [0], [0], [1], [0, 0, 1, 1], [], []>} : vector<4x4xbf16>, vector<4x128xbf16>, vector<4x128xf32> -> vector<4x128xf32>
    %c1 = arith.constant 1 : index
    %c0_15 = arith.constant 0 : index
    %c0_16 = arith.constant 0 : index
    %27 = vector.load %arg5[%c1, %c0_15, %c0_16] : memref<3x4x4xbf16, #tpu.memory_space<vmem>>, vector<1x4x4xbf16>
    %28 = vector.shape_cast %27 : vector<1x4x4xbf16> to vector<4x4xbf16>
    %cst_17 = arith.constant dense<0.000000e+00> : vector<4x128xf32>
    %29 = tpu.matmul %28, %2, %cst_17 {dimension_numbers = #tpu.dot_dimension_numbers<[1], [0], [0], [1], [0, 0, 1, 1], [], []>} : vector<4x4xbf16>, vector<4x128xbf16>, vector<4x128xf32> -> vector<4x128xf32>
    %c2 = arith.constant 2 : index
    %c0_18 = arith.constant 0 : index
    %c0_19 = arith.constant 0 : index
    %30 = vector.load %arg5[%c2, %c0_18, %c0_19] : memref<3x4x4xbf16, #tpu.memory_space<vmem>>, vector<1x4x4xbf16>
    %31 = vector.shape_cast %30 : vector<1x4x4xbf16> to vector<4x4xbf16>
    %cst_20 = arith.constant dense<0.000000e+00> : vector<4x128xf32>
    %32 = tpu.matmul %31, %2, %cst_20 {dimension_numbers = #tpu.dot_dimension_numbers<[1], [0], [0], [1], [0, 0, 1, 1], [], []>} : vector<4x4xbf16>, vector<4x128xbf16>, vector<4x128xf32> -> vector<4x128xf32>
    %c0_21 = arith.constant 0 : index
    %c0_22 = arith.constant 0 : index
    %c0_23 = arith.constant 0 : index
    %33 = vector.load %arg5[%c0_21, %c0_22, %c0_23] : memref<3x4x4xbf16, #tpu.memory_space<vmem>>, vector<1x4x4xbf16>
    %34 = vector.shape_cast %33 : vector<1x4x4xbf16> to vector<4x4xbf16>
    %cst_24 = arith.constant dense<0.000000e+00> : vector<4x1xf32>
    %35 = tpu.matmul %34, %22, %cst_24 {dimension_numbers = #tpu.dot_dimension_numbers<[1], [0], [0], [1], [0, 0, 1, 1], [], []>} : vector<4x4xbf16>, vector<4x1xbf16>, vector<4x1xf32> -> vector<4x1xf32>
    %c2_25 = arith.constant 2 : index
    %c0_26 = arith.constant 0 : index
    %c0_27 = arith.constant 0 : index
    %36 = vector.load %arg5[%c2_25, %c0_26, %c0_27] : memref<3x4x4xbf16, #tpu.memory_space<vmem>>, vector<1x4x4xbf16>
    %37 = vector.shape_cast %36 : vector<1x4x4xbf16> to vector<4x4xbf16>
    %cst_28 = arith.constant dense<0.000000e+00> : vector<4x1xf32>
    %38 = tpu.matmul %37, %23, %cst_28 {dimension_numbers = #tpu.dot_dimension_numbers<[1], [0], [0], [1], [0, 0, 1, 1], [], []>} : vector<4x4xbf16>, vector<4x1xbf16>, vector<4x1xf32> -> vector<4x1xf32>
    %c1_i32 = arith.constant 1 : i32
    %39 = tpu.dynamic_rotate %26 by %c1_i32 dim 1 : vector<4x128xf32>, i32 -> vector<4x128xf32>
    %40 = vector.shape_cast %5 : vector<1x128xi1> to vector<1x128xi1>
    %41 = vector.broadcast %40 : vector<1x128xi1> to vector<4x128xi1>
    %42 = vector.shape_cast %35 : vector<4x1xf32> to vector<4x1xf32>
    %43 = vector.broadcast %42 : vector<4x1xf32> to vector<4x128xf32>
    %44 = arith.select %41, %43, %39 : vector<4x128xi1>, vector<4x128xf32>
    %c127_i32_29 = arith.constant 127 : i32
    %45 = tpu.dynamic_rotate %32 by %c127_i32_29 dim 1 : vector<4x128xf32>, i32 -> vector<4x128xf32>
    %46 = vector.shape_cast %7 : vector<1x128xi1> to vector<1x128xi1>
    %47 = vector.broadcast %46 : vector<1x128xi1> to vector<4x128xi1>
    %48 = vector.shape_cast %38 : vector<4x1xf32> to vector<4x1xf32>
    %49 = vector.broadcast %48 : vector<4x1xf32> to vector<4x128xf32>
    %50 = arith.select %47, %49, %45 : vector<4x128xi1>, vector<4x128xf32>
    %51 = arith.addf %29, %44 : vector<4x128xf32>
    %52 = arith.addf %51, %50 : vector<4x128xf32>
    %c0_30 = arith.constant 0 : index
    %c0_31 = arith.constant 0 : index
    %53 = vector.load %arg7[%c0_30, %c0_31] : memref<4x1xf32, #tpu.memory_space<vmem>>, vector<4x1xf32>
    %54 = vector.broadcast %53 : vector<4x1xf32> to vector<4x128xf32>
    %55 = arith.addf %52, %54 : vector<4x128xf32>
    %cst_32 = arith.constant 0.000000e+00 : f32
    %56 = vector.broadcast %cst_32 : f32 to vector<4x128xf32>
    %57 = arith.cmpf ogt, %55, %56 : vector<4x128xf32>
    %cst_33 = arith.constant 2.000000e-01 : f32
    %58 = vector.broadcast %cst_33 : f32 to vector<4x128xf32>
    %59 = arith.mulf %58, %55 : vector<4x128xf32>
    %60 = arith.select %57, %55, %59 : vector<4x128xi1>, vector<4x128xf32>
    %c128_i32 = arith.constant 128 : i32
    %61 = arith.muli %arg1, %c128_i32 : i32
    %62 = vector.broadcast %61 : i32 to vector<1x128xi32>
    %63 = arith.addi %62, %3 : vector<1x128xi32>
    %c16_i32 = arith.constant 16 : i32
    %64 = vector.broadcast %c16_i32 : i32 to vector<1x128xi32>
    %65 = arith.cmpi slt, %63, %64 : vector<1x128xi32>
    %cst_34 = arith.constant 0.000000e+00 : f32
    %66 = vector.shape_cast %65 : vector<1x128xi1> to vector<1x128xi1>
    %67 = vector.broadcast %66 : vector<1x128xi1> to vector<4x128xi1>
    %68 = vector.broadcast %cst_34 : f32 to vector<4x128xf32>
    %69 = arith.select %67, %60, %68 : vector<4x128xi1>, vector<4x128xf32>
    %70 = vector.extract_strided_slice %16 {offsets = [0, 0], sizes = [4, 1], strides = [1, 1]} : vector<4x2xbf16> to vector<4x1xbf16>
    %71 = vector.extract_strided_slice %2 {offsets = [0, 127], sizes = [4, 1], strides = [1, 1]} : vector<4x128xbf16> to vector<4x1xbf16>
    %72 = tpu.concatenate %70, %71 in 1 : vector<4x1xbf16>, vector<4x1xbf16> -> vector<4x2xbf16>
    %73 = vector.extract_strided_slice %16 {offsets = [0, 1], sizes = [4, 1], strides = [1, 1]} : vector<4x2xbf16> to vector<4x1xbf16>
    %74 = vector.extract_strided_slice %21 {offsets = [0, 0], sizes = [4, 1], strides = [1, 1]} : vector<4x2xbf16> to vector<4x1xbf16>
    %75 = tpu.concatenate %73, %74 in 1 : vector<4x1xbf16>, vector<4x1xbf16> -> vector<4x2xbf16>
    %76 = vector.extract_strided_slice %2 {offsets = [0, 0], sizes = [4, 1], strides = [1, 1]} : vector<4x128xbf16> to vector<4x1xbf16>
    %77 = vector.extract_strided_slice %21 {offsets = [0, 1], sizes = [4, 1], strides = [1, 1]} : vector<4x2xbf16> to vector<4x1xbf16>
    %78 = tpu.concatenate %76, %77 in 1 : vector<4x1xbf16>, vector<4x1xbf16> -> vector<4x2xbf16>
    %79 = tpu.concatenate %72, %75, %78 in 0 : vector<4x2xbf16>, vector<4x2xbf16>, vector<4x2xbf16> -> vector<12x2xbf16>
    %c0_35 = arith.constant 0 : index
    %c0_36 = arith.constant 0 : index
    %80 = vector.load %arg6[%c0_35, %c0_36] : memref<4x12xbf16, #tpu.memory_space<vmem>>, vector<4x12xbf16>
    %cst_37 = arith.constant dense<0.000000e+00> : vector<4x2xf32>
    %81 = tpu.matmul %80, %79, %cst_37 {dimension_numbers = #tpu.dot_dimension_numbers<[1], [0], [0], [1], [0, 0, 1, 1], [], []>} : vector<4x12xbf16>, vector<12x2xbf16>, vector<4x2xf32> -> vector<4x2xf32>
    %c0_38 = arith.constant 0 : index
    %c0_39 = arith.constant 0 : index
    %82 = vector.load %arg7[%c0_38, %c0_39] : memref<4x1xf32, #tpu.memory_space<vmem>>, vector<4x1xf32>
    %83 = vector.broadcast %82 : vector<4x1xf32> to vector<4x2xf32>
    %84 = arith.addf %81, %83 : vector<4x2xf32>
    %cst_40 = arith.constant 0.000000e+00 : f32
    %85 = vector.broadcast %cst_40 : f32 to vector<4x2xf32>
    %86 = arith.cmpf ogt, %84, %85 : vector<4x2xf32>
    %cst_41 = arith.constant 2.000000e-01 : f32
    %87 = vector.broadcast %cst_41 : f32 to vector<4x2xf32>
    %88 = arith.mulf %87, %84 : vector<4x2xf32>
    %89 = arith.select %86, %84, %88 : vector<4x2xi1>, vector<4x2xf32>
    %c0_i32_42 = arith.constant 0 : i32
    %90 = arith.cmpi sgt, %arg1, %c0_i32_42 : i32
    %c128_i32_43 = arith.constant 128 : i32
    %91 = arith.muli %arg1, %c128_i32_43 : i32
    %c16_i32_44 = arith.constant 16 : i32
    %92 = arith.cmpi sle, %91, %c16_i32_44 : i32
    %93 = arith.andi %90, %92 : i1
    %94 = vector.extract_strided_slice %89 {offsets = [0, 0], sizes = [4, 1], strides = [1, 1]} : vector<4x2xf32> to vector<4x1xf32>
    %cst_45 = arith.constant 0.000000e+00 : f32
    %95 = vector.broadcast %cst_45 : f32 to vector<4x1xf32>
    %96 = arith.select %93, %94, %95 : vector<4x1xf32>
    %c1_i32_46 = arith.constant 1 : i32
    %97 = arith.addi %arg1, %c1_i32_46 : i32
    %c128_i32_47 = arith.constant 128 : i32
    %98 = arith.muli %97, %c128_i32_47 : i32
    %c16_i32_48 = arith.constant 16 : i32
    %99 = arith.cmpi slt, %98, %c16_i32_48 : i32
    %100 = vector.extract_strided_slice %89 {offsets = [0, 1], sizes = [4, 1], strides = [1, 1]} : vector<4x2xf32> to vector<4x1xf32>
    %cst_49 = arith.constant 0.000000e+00 : f32
    %101 = vector.broadcast %cst_49 : f32 to vector<4x1xf32>
    %102 = arith.select %99, %100, %101 : vector<4x1xf32>
    %103 = arith.truncf %69 : vector<4x128xf32> to vector<4x128xbf16>
    %104 = arith.truncf %96 : vector<4x1xf32> to vector<4x1xbf16>
    %105 = arith.truncf %102 : vector<4x1xf32> to vector<4x1xbf16>
    %c0_50 = arith.constant 0 : index
    %c0_51 = arith.constant 0 : index
    %c0_52 = arith.constant 0 : index
    %106 = vector.load %arg8[%c0_50, %c0_51, %c0_52] : memref<3x4x4xbf16, #tpu.memory_space<vmem>>, vector<1x4x4xbf16>
    %107 = vector.shape_cast %106 : vector<1x4x4xbf16> to vector<4x4xbf16>
    %cst_53 = arith.constant dense<0.000000e+00> : vector<4x128xf32>
    %108 = tpu.matmul %107, %103, %cst_53 {dimension_numbers = #tpu.dot_dimension_numbers<[1], [0], [0], [1], [0, 0, 1, 1], [], []>} : vector<4x4xbf16>, vector<4x128xbf16>, vector<4x128xf32> -> vector<4x128xf32>
    %c1_54 = arith.constant 1 : index
    %c0_55 = arith.constant 0 : index
    %c0_56 = arith.constant 0 : index
    %109 = vector.load %arg8[%c1_54, %c0_55, %c0_56] : memref<3x4x4xbf16, #tpu.memory_space<vmem>>, vector<1x4x4xbf16>
    %110 = vector.shape_cast %109 : vector<1x4x4xbf16> to vector<4x4xbf16>
    %cst_57 = arith.constant dense<0.000000e+00> : vector<4x128xf32>
    %111 = tpu.matmul %110, %103, %cst_57 {dimension_numbers = #tpu.dot_dimension_numbers<[1], [0], [0], [1], [0, 0, 1, 1], [], []>} : vector<4x4xbf16>, vector<4x128xbf16>, vector<4x128xf32> -> vector<4x128xf32>
    %c2_58 = arith.constant 2 : index
    %c0_59 = arith.constant 0 : index
    %c0_60 = arith.constant 0 : index
    %112 = vector.load %arg8[%c2_58, %c0_59, %c0_60] : memref<3x4x4xbf16, #tpu.memory_space<vmem>>, vector<1x4x4xbf16>
    %113 = vector.shape_cast %112 : vector<1x4x4xbf16> to vector<4x4xbf16>
    %cst_61 = arith.constant dense<0.000000e+00> : vector<4x128xf32>
    %114 = tpu.matmul %113, %103, %cst_61 {dimension_numbers = #tpu.dot_dimension_numbers<[1], [0], [0], [1], [0, 0, 1, 1], [], []>} : vector<4x4xbf16>, vector<4x128xbf16>, vector<4x128xf32> -> vector<4x128xf32>
    %c0_62 = arith.constant 0 : index
    %c0_63 = arith.constant 0 : index
    %c0_64 = arith.constant 0 : index
    %115 = vector.load %arg8[%c0_62, %c0_63, %c0_64] : memref<3x4x4xbf16, #tpu.memory_space<vmem>>, vector<1x4x4xbf16>
    %116 = vector.shape_cast %115 : vector<1x4x4xbf16> to vector<4x4xbf16>
    %cst_65 = arith.constant dense<0.000000e+00> : vector<4x1xf32>
    %117 = tpu.matmul %116, %104, %cst_65 {dimension_numbers = #tpu.dot_dimension_numbers<[1], [0], [0], [1], [0, 0, 1, 1], [], []>} : vector<4x4xbf16>, vector<4x1xbf16>, vector<4x1xf32> -> vector<4x1xf32>
    %c2_66 = arith.constant 2 : index
    %c0_67 = arith.constant 0 : index
    %c0_68 = arith.constant 0 : index
    %118 = vector.load %arg8[%c2_66, %c0_67, %c0_68] : memref<3x4x4xbf16, #tpu.memory_space<vmem>>, vector<1x4x4xbf16>
    %119 = vector.shape_cast %118 : vector<1x4x4xbf16> to vector<4x4xbf16>
    %cst_69 = arith.constant dense<0.000000e+00> : vector<4x1xf32>
    %120 = tpu.matmul %119, %105, %cst_69 {dimension_numbers = #tpu.dot_dimension_numbers<[1], [0], [0], [1], [0, 0, 1, 1], [], []>} : vector<4x4xbf16>, vector<4x1xbf16>, vector<4x1xf32> -> vector<4x1xf32>
    %c1_i32_70 = arith.constant 1 : i32
    %121 = tpu.dynamic_rotate %108 by %c1_i32_70 dim 1 : vector<4x128xf32>, i32 -> vector<4x128xf32>
    %122 = vector.shape_cast %5 : vector<1x128xi1> to vector<1x128xi1>
    %123 = vector.broadcast %122 : vector<1x128xi1> to vector<4x128xi1>
    %124 = vector.shape_cast %117 : vector<4x1xf32> to vector<4x1xf32>
    %125 = vector.broadcast %124 : vector<4x1xf32> to vector<4x128xf32>
    %126 = arith.select %123, %125, %121 : vector<4x128xi1>, vector<4x128xf32>
    %c127_i32_71 = arith.constant 127 : i32
    %127 = tpu.dynamic_rotate %114 by %c127_i32_71 dim 1 : vector<4x128xf32>, i32 -> vector<4x128xf32>
    %128 = vector.shape_cast %7 : vector<1x128xi1> to vector<1x128xi1>
    %129 = vector.broadcast %128 : vector<1x128xi1> to vector<4x128xi1>
    %130 = vector.shape_cast %120 : vector<4x1xf32> to vector<4x1xf32>
    %131 = vector.broadcast %130 : vector<4x1xf32> to vector<4x128xf32>
    %132 = arith.select %129, %131, %127 : vector<4x128xi1>, vector<4x128xf32>
    %133 = arith.addf %111, %126 : vector<4x128xf32>
    %134 = arith.addf %133, %132 : vector<4x128xf32>
    %c0_72 = arith.constant 0 : index
    %c0_73 = arith.constant 0 : index
    %135 = vector.load %arg9[%c0_72, %c0_73] : memref<4x1xf32, #tpu.memory_space<vmem>>, vector<4x1xf32>
    %136 = vector.broadcast %135 : vector<4x1xf32> to vector<4x128xf32>
    %137 = arith.addf %134, %136 : vector<4x128xf32>
    %138 = arith.addf %137, %1 : vector<4x128xf32>
    %c0_74 = arith.constant 0 : index
    %c0_75 = arith.constant 0 : index
    %c0_76 = arith.constant 0 : index
    %139 = vector.load %arg10[%c0_74, %c0_75, %c0_76] : memref<1x4x128xf32, #tpu.memory_space<vmem>>, vector<1x4x128xf32>
    %140 = vector.shape_cast %139 : vector<1x4x128xf32> to vector<4x128xf32>
    %141 = vector.shape_cast %138 : vector<4x128xf32> to vector<1x4x128xf32>
    tpu.vector_store %arg10[%c0_74, %c0_75, %c0_76], %141 {strides = array<i32>} : memref<1x4x128xf32, #tpu.memory_space<vmem>>, vector<1x4x128xf32>,
    return
  }
  func.func @transform_0(%arg0: i32, %arg1: i32) -> (i32, i32, i32) {
    %c0_i32 = arith.constant 0 : i32
    %c0_i32_0 = arith.constant 0 : i32
    return %arg0, %c0_i32, %arg1 : i32, i32, i32
  }
  func.func @transform_1(%arg0: i32, %arg1: i32) -> (i32, i32, i32) {
    %c1_i32 = arith.constant 1 : i32
    %0 = arith.muli %arg1, %c1_i32 : i32
    %c1_i32_0 = arith.constant 1 : i32
    %1 = arith.subi %0, %c1_i32_0 : i32
    %c0_i32 = arith.constant 0 : i32
    %2 = arith.maxsi %1, %c0_i32 : i32
    %c0_i32_1 = arith.constant 0 : i32
    %c0_i32_2 = arith.constant 0 : i32
    return %arg0, %c0_i32_1, %2 : i32, i32, i32
  }
  func.func @transform_2(%arg0: i32, %arg1: i32) -> (i32, i32, i32) {
    %c1_i32 = arith.constant 1 : i32
    %0 = arith.addi %arg1, %c1_i32 : i32
    %c1_i32_0 = arith.constant 1 : i32
    %1 = arith.muli %0, %c1_i32_0 : i32
    %c0_i32 = arith.constant 0 : i32
    %2 = arith.minsi %1, %c0_i32 : i32
    %c0_i32_1 = arith.constant 0 : i32
    %c0_i32_2 = arith.constant 0 : i32
    return %arg0, %c0_i32_1, %2 : i32, i32, i32
  }
  func.func @transform_3(%arg0: i32, %arg1: i32) -> (i32, i32, i32) {
    %c0_i32 = arith.constant 0 : i32
    %c0_i32_0 = arith.constant 0 : i32
    %c0_i32_1 = arith.constant 0 : i32
    %c0_i32_2 = arith.constant 0 : i32
    return %c0_i32, %c0_i32_0, %c0_i32_1 : i32, i32, i32
  }
  func.func @transform_4(%arg0: i32, %arg1: i32) -> (i32, i32) {
    %c0_i32 = arith.constant 0 : i32
    %c0_i32_0 = arith.constant 0 : i32
    %c0_i32_1 = arith.constant 0 : i32
    return %c0_i32, %c0_i32_0 : i32, i32
  }
  func.func @transform_5(%arg0: i32, %arg1: i32) -> (i32, i32) {
    %c0_i32 = arith.constant 0 : i32
    %c0_i32_0 = arith.constant 0 : i32
    %c0_i32_1 = arith.constant 0 : i32
    return %c0_i32, %c0_i32_0 : i32, i32
  }
  func.func @transform_6(%arg0: i32, %arg1: i32) -> (i32, i32, i32) {
    %c0_i32 = arith.constant 0 : i32
    %c0_i32_0 = arith.constant 0 : i32
    %c0_i32_1 = arith.constant 0 : i32
    %c0_i32_2 = arith.constant 0 : i32
    return %c0_i32, %c0_i32_0, %c0_i32_1 : i32, i32, i32
  }
  func.func @transform_7(%arg0: i32, %arg1: i32) -> (i32, i32) {
    %c0_i32 = arith.constant 0 : i32
    %c0_i32_0 = arith.constant 0 : i32
    %c0_i32_1 = arith.constant 0 : i32
    return %c0_i32, %c0_i32_0 : i32, i32
  }
  func.func @transform_8(%arg0: i32, %arg1: i32) -> (i32, i32, i32) {
    %c0_i32 = arith.constant 0 : i32
    %c0_i32_0 = arith.constant 0 : i32
    return %arg0, %c0_i32, %arg1 : i32, i32, i32
  }
}

</mosaic_0001>

<bundles_post_ra>
// kernel: tpu_custom_call.1
= control target key start
LH: loop header
LB: loop body
LE: loop exit
PB: predicated region body
PF: predicated region fallthrough
CT: control target
= control target key end

     0   :  { %s1931_s0 = inlined_call_operand.vmem [shape: f32[2,4,128], index: 0, kind: input, shape index: {}]   ;;  %s1932_s1 = inlined_call_operand.hbm [shape: f32[2,4,128], index: 1, kind: input, shape index: {}]   ;;  %s1933_s2 = inlined_call_operand.vmem [shape: f32[2,4,128], index: 2, kind: input, shape index: {}]   ;;  %s1934_s3 = inlined_call_operand.hbm [shape: bf16[3,4,4], index: 3, kind: input, shape index: {}]   ;;  %s1935_s4 = inlined_call_operand.vmem [shape: bf16[4,12], index: 4, kind: input, shape index: {}]   ;;  %s1936_s5 = inlined_call_operand.vmem [shape: f32[4,1], index: 5, kind: input, shape index: {}]   ;;  %s1937_s6 = inlined_call_operand.vmem [shape: bf16[3,4,4], index: 6, kind: input, shape index: {}]   ;;  %s1938_s7 = inlined_call_operand.vmem [shape: f32[4,1], index: 7, kind: input, shape index: {}]   ;;  %s1939_s8 = inlined_call_operand.hbm [shape: f32[2,4,128], index: 8, kind: output, shape index: {}]  }
   0x1   :  { %1945 = sst [smem:[#allocation12_spill]] %s1934_s3 }
   0x2   :  { %13 = vsyncpa [#allocation3], 0 }
   0x3   :  { %15 = vsyncpa [#allocation3 + $0x1], 0 }
   0x4   :  { %16 = vsyncpa [#allocation6], 0 }
   0x5   :  { %17 = vsyncpa [#allocation4], 0 }
   0x6   :  { %19 = vsyncpa [#allocation4 + $0x1], 0  ;;  %s1610_s2 = smov 0   ;;  %s1612_s27 = smov 0  }
   0x7   :  { %s1614_s28 = smov 0   ;;  %s1616_s29 = smov 0  }
   0x8   :  { %s1618_s30 = smov 0   ;;  %s1620_s9 = smov 0  }
   0x9 LB: > { %s1205_s10 = sadd.s32 4294967295, %s1551_s9   ;;  %s1206_s11 = sadd.s32 4294967294, %s1551_s9   ;;  %s1551_s9 = sphi %s1620_s9, %s25_s9   ;;  %s1547_s30 = sphi %s1618_s30, %s1968_s30   ;;  %s1543_s29 = sphi %s1616_s29, %s1967_s29   ;;  %s1539_s28 = sphi %s1614_s28, %s1966_s28   ;;  %s1535_s27 = sphi %s1612_s27, %s1965_s27   ;;  %s1531_s2 = sphi %s1610_s2, %s1964_s2  }
   0xa   : > { %p93_p0 = scmp.ne.s32.totalorder %s1535_s27, %s1531_s2  ;;  %p1644_p1 = scmp.eq.s32.totalorder %s1205_s10, 0 }
   0xb   : > { %p1648_p2 = scmp.eq.s32.totalorder %s1205_s10, 1  ;;  %p264_p3 = scmp.eq.s32.totalorder %s1206_s11, 1 }
   0xc   : > { %s1946_s12 = scalar_select %p1644_p1, 1, 0 }
   0xd   : > { %s1947_s13 = scalar_select %p1648_p2, 1, 0 }
   0xe   : > { %p1654_p4 = por %p1644_p1, %p93_p0  ;;  %p1207_p5 = scmp.ge.s32.totalorder %s1551_s9, 1 }
   0xf   : > { %p1659_p6 = por %p264_p3, %p93_p0  ;;  %p271_p7 = scmp.lt.s32.totalorder %s1551_s9, 3 }
  0x10   : > { %s1948_s14 = scalar_select %p1654_p4, 1, 0 }
  0x11   : > { %s1949_s15 = scalar_select %p1659_p6, 1, 0 }
  0x12   : > { %p1664_p8 = pnand %p1207_p5, %p271_p7  ;;  %s1553_s17 = smov [#allocation5]  }
  0x13   : > { %s283_s18 = sshll.u32 %s1553_s17, 4  ;;  %s37_s20 = sadd.s32 1, %s1547_s30  ;;  %s284_s18 = int_to_ptr.vmem [resolvable:$true] %s283_s18 }
  0x14   : > { %s1950_s16 = scalar_select %p1664_p8, 1, 0 }
  0x15   : > { %p1331_p9 = pneg %p1664_p8  ;;  %s1952_s3 = sld [smem:[#allocation12_spill]] }
  0x17   : > { %p1673_p11 = pnand %p1331_p9, %p1644_p1 }
  0x19   : > { %p1409_p13 = pneg %p1673_p11 }
  0x1b   : > { %s1407_s23 = scalar_lea.hbm %s1952_s3, 96 }
  0x1c   : > { %p1408_p12 = scmp.ne.s32.totalorder %s1952_s3, %s1407_s23  ;;  %p1414_p5 = scmp.lt.u32.totalorder %s1407_s23, %s1952_s3 }
  0x1e   : > { %p1410_p0 = pnand %p1409_p13, %p1408_p12 }
  0x20   : > { %p1411_p3 = pneg %p1410_p0 }
  0x22   : > { %p1416_p7 = pnand %p1414_p5, %p1411_p3 }
  0x24   : > { %1419 = shalt.err (!%p1416_p7)
}
  0x25   : > { %s1420_s11 = scalar_lea.vmem %s284_s18, 96  ;;  %p1428_p1 = scmp.lt.s32.totalorder %s284_s18, %s284_s18 }
  0x26   : > { %p1421_p9 = scmp.ne.s32.totalorder %s284_s18, %s1420_s11  ;;  %p1429_p4 = scmp.lt.s32.totalorder %s1420_s11, %s1420_s11 }
  0x28   : > { %p1423_p10 = pnand %p1421_p9, %p1409_p13  ;;  %p1430_p8 = por %p1429_p4, %p1428_p1 }
  0x2a   : > { %p1424_p6 = pneg %p1423_p10 }
  0x2c   : > { %p1431_p2 = pnand %p1430_p8, %p1424_p6 }
  0x2e   : > { %1434 = shalt.err (!%p1431_p2)
}
  0x2f   : > { %s1554_s17 = smov 32   ;;  %s1555_s21 = smov 2  }
  0x30   : > { %1334 = dma.hbm_to_vmem [thread:$0]  (!%p1673_p11), %s1952_s3, 96, %s284_s18, [#allocation6], %s1554_s17, %s1554_s17, %s1555_s21  }
  0x31   : > { %p39_p1 = scmp.ge.s32.totalorder %s37_s20, 2  ;;  %s80_s24 = sadd.s32 1, %s1539_s28 }
  0x32   : > { %p87_p2 = scmp.ne.s32.totalorder %s1539_s28, %s1535_s27  ;;  %p88_p4 = scmp.eq.s32.totalorder %s1551_s9, 0 }
  0x33   : > { %s1970_s20 = smov (%p39_p1, %s37_s20), 0  ;;  %p1955_p8 = scmp.ne.s32.totalorder %s1947_s13, 0 }
  0x34   : > { %1953 = sst [smem:[#allocation11_spill]] %s1970_s20  ;;  %p1700_p6 = por %p88_p4, %p87_p2 }
  0x35   : > { %p1706_p10 = por %p1955_p8, %p87_p2  ;;  %s75_s19 = ssub.s32 %s1547_s30, %s1970_s20 }
  0x36   : > { %p1344_p12 = scmp.lt.s32.totalorder %s1551_s9, 2  ;;  %p78_p11 = scmp.eq.s32.totalorder %s75_s19, 0 }
  0x37   : > { %s319_s18 = sand.u32 1, %s1539_s28   ;;  %s1211_s17 = sshll.u32 %s1547_s30, 6 }
  0x38   : > { %s1210_s10 = sshll.u32 %s319_s18, 2  ;;  %s1721_s23 = scalar_lea.hbm %s1932_s1, %s1211_s17 }
  0x39   : > { %s1715_s11 = scalar_select %p78_p11, %s1539_s28, %s80_s24  }
  0x3a   : > { %s323_s13 = scalar_lea.vmem [#allocation2], %s1210_s10  ;;  %p1727_p13 = pnand %p1344_p12, %p1700_p6 }
  0x3b   : > { %s334_s3 = sshll.u32 %s323_s13, 4  ;;  %s320_s24 = scalar_lea.sflag [#allocation3], %s319_s18  ;;  %s1723_s3 = int_to_ptr.vmem [resolvable:$true] %s334_s3 }
  0x3c   : > { %s1435_s20 = scalar_lea.hbm %s1721_s23, 64  ;;  %p1437_p3 = pneg %p1727_p13 }
  0x3d   : > { %p1436_p0 = scmp.ne.s32.totalorder %s1721_s23, %s1435_s20  ;;  %s1440_s21 = scalar_lea.hbm %s1932_s1, 128 }
  0x3e   : > { %p1441_p9 = scmp.lt.u32.totalorder %s1721_s23, %s1932_s1  ;;  %p1442_p1 = scmp.lt.u32.totalorder %s1440_s21, %s1435_s20 }
  0x3f   : > { %p1438_p5 = pnand %p1437_p3, %p1436_p0  ;;  %p1444_p4 = scmp.lt.u32.totalorder %s1435_s20, %s1721_s23 }
  0x40   : > { %p1443_p2 = por %p1442_p1, %p1441_p9 }
  0x41   : > { %p1439_p7 = pneg %p1438_p5 }
  0x42   : > { %p1445_p6 = por %p1444_p4, %p1443_p2 }
  0x44   : > { %p1446_p8 = pnand %p1445_p6, %p1439_p7 }
  0x46   : > { %1449 = shalt.err (!%p1446_p8)
}
  0x47   : > { %s1450_s18 = scalar_lea.vmem %s1723_s3, 64  ;;  %s1556_s13 = smov [#allocation2]  }
  0x48   : > { %p1451_p12 = scmp.ne.s32.totalorder %s1723_s3, %s1450_s18  ;;  %s1455_s10 = sshll.u32 %s1556_s13, 4  ;;  %s1456_s10 = int_to_ptr.vmem [resolvable:$false] %s1455_s10 }
  0x49   : > { %s1457_s17 = scalar_lea.vmem %s1456_s10, 128  ;;  %p1458_p5 = scmp.lt.s32.totalorder %s1723_s3, %s1456_s10 }
  0x4a   : > { %p1453_p11 = pnand %p1451_p12, %p1437_p3  ;;  %p1459_p9 = scmp.lt.s32.totalorder %s1457_s17, %s1450_s18 }
  0x4c   : > { %p1454_p0 = pneg %p1453_p11  ;;  %p1460_p1 = por %p1459_p9, %p1458_p5 }
  0x4e   : > { %p1461_p2 = pnand %p1460_p1, %p1454_p0 }
  0x50   : > { %1464 = shalt.err (!%p1461_p2)
}
  0x51   : > { %1338 = dma.hbm_to_vmem [thread:$0]  (!%p1727_p13), %s1721_s23, 64, %s1723_s3, %s320_s24  }
  0x52   : > { %p1958_p7 = scmp.ne.s32.totalorder %s1950_s16, 0 }
  0x53   : > { %s1759_s20 = sand.u32 (!%p1958_p7), 1, %s1535_s27   ;;  %p1959_p3 = scmp.ne.s32.totalorder (!%p1958_p7), %s1948_s14, 0 }
  0x54   : > { %359 = sbr.rel (%p1958_p7) target bundleno = 953 (0x3b9), region = 52  ;;  %s362_s21 = scalar_lea.sflag (!%p1958_p7), [#allocation3], %s1759_s20 }
  0x5b   : > { %1518 = dma.done.wait (%p1959_p3), %s362_s21, 64  }
  0x5c   : > { %1520 = vsyncadd (%p1959_p3), %s362_s21, 4294967232  ;;  %p1960_p4 = scmp.ne.s32.totalorder %s1946_s12, 0 }
  0x5e   : > { %1522 = dma.done.wait (%p1960_p4), [#allocation6], 96  }
  0x5f   : > { %1524 = vsyncadd (%p1960_p4), [#allocation6], 4294967200  ;;  %p419_p13 = scmp.lt.s32.totalorder %s1543_s29, 1  ;;  %v1557_v0 = vmov 0.0|0.0   ;;  %s1558_s3 = smov 1   ;;  %v1559_v1 = vmov 0.0   ;;  %v445_v34 = vlaneseq }
  0x60   : > { %556 = vrot.lane.b32.xlu0 %v1557_v0, %s1558_s3  ;;  %1263 = vmatprep.subr.bf16.mxu1 %v1559_v1  ;;  %vm1560_vm0 = vmmov 0   ;;  %vm464_vm1 = vcmask 1041408   ;;  %vm460_vm2 = vcmask 31744   ;;  %v511_v5 = vld [vmem:[#allocation5 + $0x4] sm:$0x3]  ;;  %v1561_v7 = vmov 0  }
  0x61   : > { %s420_s16 = scalar_select %p419_p13, %s1543_s29, 1  ;;  %1265 = vmatprep.mubr.msk.bf16.mxu1 %vm1560_vm0, %v1559_v1  ;;  %1257 = vmatprep.subr.bf16.mxu0 %v1559_v1  ;;  %v459_v6 = vld [vmem:[#allocation5] sm:$0x3]  ;;  %v509_v10 = vld [vmem:[#allocation5 + $0x2] sm:$0x3]  ;;  %v1824_v35 = vand.u32 127, %v445_v34 }
  0x62   : > { %1259 = vmatprep.mubr.msk.bf16.mxu0 %vm1560_vm0, %v1559_v1  ;;  %1406 = vset.pattern.permute.xlu1 %v1561_v7  ;;  %v708_v21 = vld [vmem:[%s1936_s5] sm:$0xf]  ;;  %s1562_s22 = smov 2   ;;  %s1563_s18 = smov 127   ;;  %vm730_vm4 = vcmask 7168   ;;  %vm746_vm6 = vcmask 1043456  }
  0x63   : > { %s1216_s12 = sshll.u32 %s420_s16, 2  ;;  %1405 = vset.pattern.permute.xlu0 %v1561_v7  ;;  %vm447_vm3 = vcmp.eq.s32.totalorder %v1824_v35, 0  ;;  %vm448_vm5 = vcmp.eq.s32.totalorder %v1824_v35, 127  ;;  %vm754_vm7 = vcmask 1045504   ;;  %vm721_vm9 = vcmp.lt.s32.totalorder %v1824_v35, 16  ;;  %s1215_s25 = sshll.u32 %s1759_s20, 2 }
  0x64   : > { %s425_s19 = scalar_lea.vmem %s1931_s0, %s1216_s12  ;;  %v749_v57 = vld [vmem:[%s1935_s4] sm:$0x3]  ;;  %vm750_vm10 = vcmask 97280   ;;  %v1226_v63 = vld [vmem:[%s1937_s6 + $0x4] sm:$0x3]  ;;  %s1071_s21 = scalar_lea.sflag [#allocation4], %s1759_s20 }
  0x65   : > { %v1783_v2 = vld [vmem:[%s425_s19] sm:$0xf] }
  0x66   : > { %v1787_v3 = vpack.c.bf16 %v1783_v2, %v1783_v2  ;;  %v818_v61 = vld [vmem:[%s1937_s6] sm:$0x3] }
  0x68   : > { %v466_v4 = vsel %vm464_vm1, %v1787_v3, 0  ;;  %v739_v40 = vsel %vm730_vm4, %v1787_v3, 0.0|0.0 }
  0x69   : > { %1264 = vmatpush3.bf16.msra.mxu1 %v466_v4  ;;  %1258 = vmatpush3.bf16.msra.mxu0 %v466_v4  ;;  %v743_v47 = vrot.slane %v739_v40, 4 }
  0x6a   : > { %1275 = vmatprep.subr.bf16.mxu1 %v1559_v1  ;;  %1269 = vmatprep.subr.bf16.mxu0 %v1559_v1 }
  0x6c   : > { %1266 = vmatmul.mubr.msk.bf16.vlgmr.msra.gmra.mrb[0].mxu1 %vm460_vm2, %v511_v5  ;;  %1260 = vmatmul.mubr.msk.bf16.vlgmr.msra.gmra.mrb[0].mxu0 %vm460_vm2, %v459_v6 }
  0x6d   : > { %1276 = vmatpush3.bf16.msra.mxu1 %v1557_v0  ;;  %1277 = vmatprep.mubr.msk.bf16.mxu1 %vm1560_vm0, %v1559_v1 }
  0x6e   : > { %1271 = vmatprep.mubr.msk.bf16.mxu0 %vm1560_vm0, %v1559_v1  ;;  %1287 = vmatprep.subr.bf16.mxu1 %v1559_v1 }
  0x74   : > { %1278 = vmatmul.mubr.msk.bf16.vlgmr.msra.gmra.mrb[4].mxu1 %vm460_vm2, %v511_v5 }
  0x75   : > { %1289 = vmatprep.mubr.msk.bf16.mxu1 %vm1560_vm0, %v1559_v1 }
  0xd2   : > { %v557_v8 = vpop.permute.xlu0 %556 }
  0xd3   : > { %v559_v9 = vsel %vm464_vm1, %v557_v8, 0 }
  0xd4   : > { %1270 = vmatpush3.bf16.msra.mxu0 %v559_v9 }
  0xd5   : > { %1281 = vmatprep.subr.bf16.mxu0 %v1559_v1 }
  0xd7   : > { %1272 = vmatmul.mubr.msk.bf16.vlgmr.msra.gmra.mrb[4].mxu0 %vm460_vm2, %v459_v6 }
  0xd8   : > { %1282 = vmatpush3.bf16.msra.mxu0 %v466_v4  ;;  %1283 = vmatprep.mubr.msk.bf16.mxu0 %vm1560_vm0, %v1559_v1 }
  0xd9   : > { %1293 = vmatprep.subr.bf16.mxu0 %v1559_v1 }
  0xdf   : > { %1284 = vmatmul.mubr.msk.bf16.vlgmr.msra.gmra.mrb[8].mxu0 %vm460_vm2, %v509_v10 }
  0xe0   : > { %1295 = vmatprep.mubr.msk.bf16.mxu0 %vm1560_vm0, %v1559_v1 }
 0x13f   : > { %v549_v11 = vpop.f32.mrb[0].mxu1  ;;  %v502_v12 = vpop.f32.mrb[0].mxu0 }
 0x140   : > { %v1267_v13 = vpop.f32.mrb[1].mxu1  ;;  %v1261_v14 = vpop.f32.mrb[1].mxu0 }
 0x141   : > { %v552_v15 = vpop.f32.mrb[2].mxu1  ;;  %v505_v16 = vpop.f32.mrb[2].mxu0 }
 0x142   : > { %v1268_v17 = vpop.f32.mrb[3].mxu1  ;;  %v1262_v18 = vpop.f32.mrb[3].mxu0 }
 0x143   : > { %v1061_v17 = vld [vmem:[%s1938_s7] sm:$0xf] }
 0x147   : > { %v638_v19 = vpop.f32.mrb[4].mxu1 }
 0x148   : > { %660 = vperm.xlu1 %1406, %v638_v19   ;;  %v1279_v20 = vpop.f32.mrb[5].mxu1 }
 0x149   : > { %v641_v22 = vpop.f32.mrb[6].mxu1 }
 0x14a   : > { %v1280_v23 = vpop.f32.mrb[7].mxu1 }
 0x14c   : > { %711 = vperm.xlu1 %1406, %v708_v21  }
 0x150   : > { %644 = vrot.lane.b32.xlu1 %v502_v12, %s1558_s3 }
 0x154   : > { %735 = vrot.lane.b32.xlu1 %v1557_v0, %s1558_s3 }
 0x158   : > { %728 = vrot.lane.b32.xlu1 %v1787_v3, %s1562_s22 }
 0x1aa   : > { %v595_v24 = vpop.f32.mrb[4].mxu0 }
 0x1ab   : > { %650 = vperm.xlu0 %1405, %v595_v24   ;;  %v1273_v25 = vpop.f32.mrb[5].mxu0 }
 0x1ac   : > { %v598_v26 = vpop.f32.mrb[6].mxu0 }
 0x1ad   : > { %v1274_v27 = vpop.f32.mrb[7].mxu0 }
 0x1af   : > { %654 = vrot.lane.b32.xlu0 %v549_v11, %s1563_s18 }
 0x1b2   : > { %v701_v28 = vpop.f32.mrb[8].mxu0 }
 0x1b3   : > { %725 = vrot.lane.b32.xlu0 %v1557_v0, %s1562_s22  ;;  %v1285_v29 = vpop.f32.mrb[9].mxu0  ;;  %s418_s22 = scalar_lea.vmem [#allocation7], %s1215_s25 }
 0x1b4   : > { %v704_v30 = vpop.f32.mrb[10].mxu0 }
 0x1b5   : > { %v1286_v31 = vpop.f32.mrb[11].mxu0 }
 0x1b7   : > { %956 = vrot.lane.b32.xlu0 %v1557_v0, %s1563_s18 }
 0x1c7   : > { %v661_v32 = vpop.permute.xlu1 %660 }
 0x1cb   : > { %v712_v33 = vpop.permute.xlu1 %711 }
 0x1cf   : > { %v645_v36 = vpop.permute.xlu1 %644 }
 0x1d3   : > { %v736_v39 = vpop.permute.xlu1 %735 }
 0x1d4   : > { %v738_v43 = vsel %vm730_vm4, %v557_v8, %v736_v39 }
 0x1d5   : > { %v741_v48 = vrot.slane %v738_v43, 6 }
 0x1d7   : > { %v729_v46 = vpop.permute.xlu1 %728 }
 0x22a   : > { %v651_v37 = vpop.permute.xlu0 %650 }
 0x22b   : > { %v653_v38 = vsel %vm447_vm3, %v651_v37, %v645_v36 }
 0x22c   : > { %v702_v41 = vadd.f32 %v701_v28, %v653_v38 }
 0x22e   : > { %v655_v42 = vpop.permute.xlu0 %654 }
 0x22f   : > { %v663_v44 = vsel %vm448_vm5, %v661_v32, %v655_v42 }
 0x230   : > { %v707_v45 = vadd.f32 %v702_v41, %v663_v44 }
 0x232   : > { %v714_v49 = vadd.f32 %v712_v33, %v707_v45  ;;  %v726_v50 = vpop.permute.xlu0 %725 }
 0x233   : > { %v733_v51 = vsel %vm730_vm4, %v726_v50, %v729_v46 }
 0x234   : > { %v716_v52 = vmul.f32 0.2, %v714_v49  ;;  %v745_v53 = vsel %vm464_vm1, %v733_v51, %v741_v48  ;;  %vm715_vm8 = vcmp.gt.f32.partialorder %v714_v49, 0.0 }
 0x235   : > { %v748_v54 = vsel %vm746_vm6, %v745_v53, %v743_v47 }
 0x236   : > { %v755_v55 = vsel %vm754_vm7, %v748_v54, 0  ;;  %v717_v56 = vsel %vm715_vm8, %v714_v49, %v716_v52  ;;  %v957_v62 = vpop.permute.xlu0 %956 }
 0x237   : > { %1288 = vmatpush3.bf16.msra.mxu1 %v755_v55  ;;  %v724_v58 = vsel %vm721_vm9, %v717_v56, 0.0  ;;  %v959_v3 = vsel %vm464_vm1, %v957_v62, 0 }
 0x238   : > { %1299 = vmatprep.subr.bf16.mxu1 %v1559_v1  ;;  %v815_v59 = vpack.c.bf16 %v724_v58, %v724_v58 }
 0x23a   : > { %1290 = vmatmul.mubr.msk.bf16.vlgmr.msra.gmra.mrb[8].mxu1 %vm750_vm10, %v749_v57  ;;  %v823_v60 = vsel %vm464_vm1, %v815_v59, 0 }
 0x23b   : > { %1294 = vmatpush3.bf16.msra.mxu0 %v823_v60  ;;  %1300 = vmatpush3.bf16.msra.mxu1 %v823_v60 }
 0x23c   : > { %1301 = vmatprep.mubr.msk.bf16.mxu1 %vm1560_vm0, %v1559_v1  ;;  %1305 = vmatprep.subr.bf16.mxu0 %v1559_v1 }
 0x23d   : > { %1311 = vmatprep.subr.bf16.mxu1 %v1559_v1 }
 0x23e   : > { %1296 = vmatmul.mubr.msk.bf16.vlgmr.msra.gmra.mrb[12].mxu0 %vm460_vm2, %v818_v61 }
 0x23f   : > { %1306 = vmatpush3.bf16.msra.mxu0 %v1557_v0  ;;  %1307 = vmatprep.mubr.msk.bf16.mxu0 %vm1560_vm0, %v1559_v1  ;;  %v1225_v0 = vld [vmem:[%s1937_s6 + $0x2] sm:$0x3] }
 0x240   : > { %1317 = vmatprep.subr.bf16.mxu0 %v1559_v1 }
 0x242   : > { %1302 = vmatmul.mubr.msk.bf16.vlgmr.msra.gmra.mrb[12].mxu1 %vm460_vm2, %v1226_v63 }
 0x243   : > { %1312 = vmatpush3.bf16.msra.mxu1 %v959_v3  ;;  %1313 = vmatprep.mubr.msk.bf16.mxu1 %vm1560_vm0, %v1559_v1 }
 0x246   : > { %1308 = vmatmul.mubr.msk.bf16.vlgmr.msra.gmra.mrb[16].mxu0 %vm460_vm2, %v818_v61 }
 0x247   : > { %1318 = vmatpush3.bf16.msra.mxu0 %v823_v60  ;;  %1319 = vmatprep.mubr.msk.bf16.mxu0 %vm1560_vm0, %v1559_v1 }
 0x24a   : > { %1314 = vmatmul.mubr.msk.bf16.vlgmr.msra.gmra.mrb[16].mxu1 %vm460_vm2, %v1226_v63 }
 0x24e   : > { %1320 = vmatmul.mubr.msk.bf16.vlgmr.msra.gmra.mrb[20].mxu0 %vm460_vm2, %v1225_v0 }
 0x30d   : > { %v791_v4 = vpop.f32.mrb[8].mxu1 }
 0x30e   : > { %v1291_v5 = vpop.f32.mrb[9].mxu1 }
 0x30f   : > { %v794_v6 = vpop.f32.mrb[10].mxu1 }
 0x310   : > { %v1292_v7 = vpop.f32.mrb[11].mxu1 }
 0x311   : > { %v859_v8 = vpop.f32.mrb[12].mxu0 }
 0x312   : > { %v1297_v9 = vpop.f32.mrb[13].mxu0 }
 0x313   : > { %v862_v10 = vpop.f32.mrb[14].mxu0 }
 0x314   : > { %v1298_v11 = vpop.f32.mrb[15].mxu0 }
 0x315   : > { %v906_v12 = vpop.f32.mrb[12].mxu1 }
 0x316   : > { %v1303_v13 = vpop.f32.mrb[13].mxu1 }
 0x317   : > { %v909_v14 = vpop.f32.mrb[14].mxu1 }
 0x318   : > { %v1304_v1 = vpop.f32.mrb[15].mxu1 }
 0x319   : > { %v949_v15 = vpop.f32.mrb[16].mxu0 }
 0x31a   : > { %1005 = vperm.xlu1 %1406, %v949_v15   ;;  %v1309_v16 = vpop.f32.mrb[17].mxu0 }
 0x31b   : > { %v952_v18 = vpop.f32.mrb[18].mxu0 }
 0x31c   : > { %v1310_v19 = vpop.f32.mrb[19].mxu0 }
 0x31d   : > { %v995_v20 = vpop.f32.mrb[16].mxu1 }
 0x31e   : > { %1013 = vperm.xlu0 %1405, %v995_v20   ;;  %1064 = vperm.xlu1 %1406, %v1061_v17   ;;  %v1315_v21 = vpop.f32.mrb[17].mxu1 }
 0x31f   : > { %v998_v22 = vpop.f32.mrb[18].mxu1 }
 0x320   : > { %v1316_v23 = vpop.f32.mrb[19].mxu1 }
 0x321   : > { %v1054_v24 = vpop.f32.mrb[20].mxu0 }
 0x322   : > { %1001 = vrot.lane.b32.xlu0 %v859_v8, %s1558_s3  ;;  %1009 = vrot.lane.b32.xlu1 %v906_v12, %s1563_s18  ;;  %v1321_v25 = vpop.f32.mrb[21].mxu0  ;;  %s1232_s3 = sshll.u32 %s1543_s29, 6  ;;  %s1085_s18 = sshll.u32 %s418_s22, 4  ;;  %s1884_s18 = int_to_ptr.vmem [resolvable:$true] %s1085_s18 }
 0x323   : > { %v1057_v26 = vpop.f32.mrb[22].mxu0  ;;  %s1882_s17 = scalar_lea.hbm %s1939_s8, %s1232_s3  ;;  %s1465_s16 = scalar_lea.vmem %s1884_s18, 64 }
 0x324   : > { %v1322_v27 = vpop.f32.mrb[23].mxu0  ;;  %p1466_p6 = scmp.ne.s32.totalorder %s1884_s18, %s1465_s16  ;;  %s1564_s29 = smov [#allocation7]  }
 0x325   : > { %s1469_s12 = sshll.u32 %s1564_s29, 4  ;;  %s1470_s12 = int_to_ptr.vmem [resolvable:$false] %s1469_s12 }
 0x326   : > { %p1467_p8 = pnand %p1466_p6, %p1706_p10  ;;  %s1471_s14 = scalar_lea.vmem %s1470_s12, 128 }
 0x327   : > { %p1472_p11 = scmp.lt.s32.totalorder %s1884_s18, %s1470_s12  ;;  %p1473_p0 = scmp.lt.s32.totalorder %s1471_s14, %s1465_s16 }
 0x328   : > { %p1468_p12 = pneg %p1467_p8 }
 0x329   : > { %p1474_p5 = por %p1473_p0, %p1472_p11 }
 0x32b   : > { %p1475_p9 = pnand %p1474_p5, %p1468_p12 }
 0x399   : > { %v1006_v28 = vpop.permute.xlu1 %1005 }
 0x39d   : > { %v1014_v29 = vpop.permute.xlu0 %1013  ;;  %v1065_v30 = vpop.permute.xlu1 %1064 }
 0x3a1   : > { %v1002_v31 = vpop.permute.xlu0 %1001  ;;  %v1010_v32 = vpop.permute.xlu1 %1009 }
 0x3a2   : > { %v1008_v33 = vsel %vm447_vm3, %v1006_v28, %v1002_v31  ;;  %v1016_v36 = vsel %vm448_vm5, %v1014_v29, %v1010_v32 }
 0x3a3   : > { %v1055_v34 = vadd.f32 %v1054_v24, %v1008_v33 }
 0x3a5   : > { %v1060_v37 = vadd.f32 %v1055_v34, %v1016_v36 }
 0x3a7   : > { %v1067_v38 = vadd.f32 %v1065_v30, %v1060_v37 }
 0x3a9   : > { %v1068_v39 = vadd.f32 %v1067_v38, %v1783_v2 }
 0x3ab   : > { %1069 = vst [vmem:[%s418_s22] sm:$0xf] %v1068_v39 }
 0x3ac   : > { %1478 = shalt.err (!%p1475_p9)
}
 0x3ad   : > { %s1479_s20 = scalar_lea.hbm %s1882_s17, 64  ;;  %s1483_s24 = scalar_lea.hbm %s1939_s8, 128 }
 0x3ae   : > { %p1480_p1 = scmp.ne.s32.totalorder %s1882_s17, %s1479_s20  ;;  %p1484_p3 = scmp.lt.u32.totalorder %s1882_s17, %s1939_s8 }
 0x3af   : > { %p1485_p4 = scmp.lt.u32.totalorder %s1483_s24, %s1479_s20  ;;  %p1487_p6 = scmp.lt.u32.totalorder %s1479_s20, %s1882_s17 }
 0x3b0   : > { %p1481_p2 = pnand %p1480_p1, %p1706_p10 }
 0x3b1   : > { %p1486_p13 = por %p1485_p4, %p1484_p3 }
 0x3b2   : > { %p1482_p7 = pneg %p1481_p2 }
 0x3b3   : > { %p1488_p8 = por %p1487_p6, %p1486_p13 }
 0x3b5   : > { %p1489_p12 = pnand %p1488_p8, %p1482_p7 }
 0x3b7   : > { %1492 = shalt.err (!%p1489_p12)
}
 0x3b8   : > { %1329 = dma.vmem_to_hbm [thread:$0]  (%p1706_p10), %s1884_s18, 64, %s1882_s17, %s1071_s21  }
 0x3b9 PF: > { %s1097_s22 = sand.u32 1, %s1531_s2   ;;  %p1961_p11 = scmp.ne.s32.totalorder %s1949_s15, 0 }
 0x3ba   : > { %p1962_p0 = scmp.ge.s32.totalorder %s1551_s9, 2  ;;  %s1098_s13 = scalar_lea.sflag [#allocation4], %s1097_s22 }
 0x3bc   : > { %p1340_p5 = pnand %p1962_p0, %p1961_p11 }
 0x3be   : > { %1526 = dma.done.wait (!%p1340_p5), %s1098_s13, 64  }
 0x3bf   : > { %1528 = vsyncadd (!%p1340_p5), %s1098_s13, 4294967232  ;;  %s25_s9 = sadd.s32 1, %s1551_s9   ;;  %s1963_s26 = sld [smem:[#allocation11_spill]] }
 0x3c0   : > { %p22_p9 = scmp.ge.s32.totalorder %s25_s9, 4   ;;  %s1964_s2 = smov %s1535_s27 }
 0x3c1   : > { %s1965_s27 = smov %s1539_s28  ;;  %s1966_s28 = smov %s1715_s11 }
 0x3c2   : > { %s1967_s29 = smov %s1547_s30  ;;  %24 = sbr.rel (!%p22_p9) target bundleno = 9 (0x9), region = 111 }
 0x3c5   : > { %s1968_s30 = smov %s1963_s26 }
 0x3c9   :  { %1103 = vsyncpa [#allocation3], 1 }
 0x3ca   :  { %1105 = vsyncpa [#allocation3 + $0x1], 1 }
 0x3cb   :  { %1106 = vsyncpa [#allocation6], 1 }
 0x3cc   :  { %1107 = vsyncpa [#allocation4], 1 }
 0x3cd   :  { %1109 = vsyncpa [#allocation4 + $0x1], 1 }

// kernel: tpu_custom_call.1
= control target key start
LH: loop header
LB: loop body
LE: loop exit
PB: predicated region body
PF: predicated region fallthrough
CT: control target
= control target key end

     0   :  { %s1931_s0 = inlined_call_operand.vmem [shape: f32[2,4,128], index: 0, kind: input, shape index: {}]   ;;  %s1932_s1 = inlined_call_operand.hbm [shape: f32[2,4,128], index: 1, kind: input, shape index: {}]   ;;  %s1933_s2 = inlined_call_operand.vmem [shape: f32[2,4,128], index: 2, kind: input, shape index: {}]   ;;  %s1934_s3 = inlined_call_operand.hbm [shape: bf16[3,4,4], index: 3, kind: input, shape index: {}]   ;;  %s1935_s4 = inlined_call_operand.vmem [shape: bf16[4,12], index: 4, kind: input, shape index: {}]   ;;  %s1936_s5 = inlined_call_operand.vmem [shape: f32[4,1], index: 5, kind: input, shape index: {}]   ;;  %s1937_s6 = inlined_call_operand.vmem [shape: bf16[3,4,4], index: 6, kind: input, shape index: {}]   ;;  %s1938_s7 = inlined_call_operand.vmem [shape: f32[4,1], index: 7, kind: input, shape index: {}]   ;;  %s1939_s8 = inlined_call_operand.hbm [shape: f32[2,4,128], index: 8, kind: output, shape index: {}]  }
   0x1   :  { %1945 = sst [smem:[#allocation12_spill]] %s1934_s3 }
   0x2   :  { %13 = vsyncpa [#allocation3], 0 }
   0x3   :  { %15 = vsyncpa [#allocation3 + $0x1], 0 }
   0x4   :  { %16 = vsyncpa [#allocation6], 0 }
   0x5   :  { %17 = vsyncpa [#allocation4], 0 }
   0x6   :  { %19 = vsyncpa [#allocation4 + $0x1], 0  ;;  %s1610_s2 = smov 0   ;;  %s1612_s27 = smov 0  }
   0x7   :  { %s1614_s28 = smov 0   ;;  %s1616_s29 = smov 0  }
   0x8   :  { %s1618_s30 = smov 0   ;;  %s1620_s9 = smov 0  }
   0x9 LB: > { %s1205_s10 = sadd.s32 4294967295, %s1551_s9   ;;  %s1206_s11 = sadd.s32 4294967294, %s1551_s9   ;;  %s1551_s9 = sphi %s1620_s9, %s25_s9   ;;  %s1547_s30 = sphi %s1618_s30, %s1968_s30   ;;  %s1543_s29 = sphi %s1616_s29, %s1967_s29   ;;  %s1539_s28 = sphi %s1614_s28, %s1966_s28   ;;  %s1535_s27 = sphi %s1612_s27, %s1965_s27   ;;  %s1531_s2 = sphi %s1610_s2, %s1964_s2  }
   0xa   : > { %p93_p0 = scmp.ne.s32.totalorder %s1535_s27, %s1531_s2  ;;  %p1644_p1 = scmp.eq.s32.totalorder %s1205_s10, 0 }
   0xb   : > { %p1648_p2 = scmp.eq.s32.totalorder %s1205_s10, 1  ;;  %p264_p3 = scmp.eq.s32.totalorder %s1206_s11, 1 }
   0xc   : > { %s1946_s12 = scalar_select %p1644_p1, 1, 0 }
   0xd   : > { %s1947_s13 = scalar_select %p1648_p2, 1, 0 }
   0xe   : > { %p1654_p4 = por %p1644_p1, %p93_p0  ;;  %p1207_p5 = scmp.ge.s32.totalorder %s1551_s9, 1 }
   0xf   : > { %p1659_p6 = por %p264_p3, %p93_p0  ;;  %p271_p7 = scmp.lt.s32.totalorder %s1551_s9, 3 }
  0x10   : > { %s1948_s14 = scalar_select %p1654_p4, 1, 0 }
  0x11   : > { %s1949_s15 = scalar_select %p1659_p6, 1, 0 }
  0x12   : > { %p1664_p8 = pnand %p1207_p5, %p271_p7  ;;  %s1553_s17 = smov [#allocation5]  }
  0x13   : > { %s283_s18 = sshll.u32 %s1553_s17, 4  ;;  %s37_s20 = sadd.s32 1, %s1547_s30  ;;  %s284_s18 = int_to_ptr.vmem [resolvable:$true] %s283_s18 }
  0x14   : > { %s1950_s16 = scalar_select %p1664_p8, 1, 0 }
  0x15   : > { %p1331_p9 = pneg %p1664_p8  ;;  %s1952_s3 = sld [smem:[#allocation12_spill]] }
  0x17   : > { %p1673_p11 = pnand %p1331_p9, %p1644_p1 }
  0x19   : > { %p1409_p13 = pneg %p1673_p11 }
  0x1b   : > { %s1407_s23 = scalar_lea.hbm %s1952_s3, 96 }
  0x1c   : > { %p1408_p12 = scmp.ne.s32.totalorder %s1952_s3, %s1407_s23  ;;  %p1414_p5 = scmp.lt.u32.totalorder %s1407_s23, %s1952_s3 }
  0x1e   : > { %p1410_p0 = pnand %p1409_p13, %p1408_p12 }
  0x20   : > { %p1411_p3 = pneg %p1410_p0 }
  0x22   : > { %p1416_p7 = pnand %p1414_p5, %p1411_p3 }
  0x24   : > { %1419 = shalt.err (!%p1416_p7)
}
  0x25   : > { %s1420_s11 = scalar_lea.vmem %s284_s18, 96  ;;  %p1428_p1 = scmp.lt.s32.totalorder %s284_s18, %s284_s18 }
  0x26   : > { %p1421_p9 = scmp.ne.s32.totalorder %s284_s18, %s1420_s11  ;;  %p1429_p4 = scmp.lt.s32.totalorder %s1420_s11, %s1420_s11 }
  0x28   : > { %p1423_p10 = pnand %p1421_p9, %p1409_p13  ;;  %p1430_p8 = por %p1429_p4, %p1428_p1 }
  0x2a   : > { %p1424_p6 = pneg %p1423_p10 }
  0x2c   : > { %p1431_p2 = pnand %p1430_p8, %p1424_p6 }
  0x2e   : > { %1434 = shalt.err (!%p1431_p2)
}
  0x2f   : > { %s1554_s17 = smov 32   ;;  %s1555_s21 = smov 2  }
  0x30   : > { %1334 = dma.hbm_to_vmem [thread:$0]  (!%p1673_p11), %s1952_s3, 96, %s284_s18, [#allocation6], %s1554_s17, %s1554_s17, %s1555_s21  }
  0x31   : > { %p39_p1 = scmp.ge.s32.totalorder %s37_s20, 2  ;;  %s80_s24 = sadd.s32 1, %s1539_s28 }
  0x32   : > { %p87_p2 = scmp.ne.s32.totalorder %s1539_s28, %s1535_s27  ;;  %p88_p4 = scmp.eq.s32.totalorder %s1551_s9, 0 }
  0x33   : > { %s1970_s20 = smov (%p39_p1, %s37_s20), 0  ;;  %p1955_p8 = scmp.ne.s32.totalorder %s1947_s13, 0 }
  0x34   : > { %1953 = sst [smem:[#allocation11_spill]] %s1970_s20  ;;  %p1700_p6 = por %p88_p4, %p87_p2 }
  0x35   : > { %p1706_p10 = por %p1955_p8, %p87_p2  ;;  %s75_s19 = ssub.s32 %s1547_s30, %s1970_s20 }
  0x36   : > { %p1344_p12 = scmp.lt.s32.totalorder %s1551_s9, 2  ;;  %p78_p11 = scmp.eq.s32.totalorder %s75_s19, 0 }
  0x37   : > { %s319_s18 = sand.u32 1, %s1539_s28   ;;  %s1211_s17 = sshll.u32 %s1547_s30, 6 }
  0x38   : > { %s1210_s10 = sshll.u32 %s319_s18, 2  ;;  %s1721_s23 = scalar_lea.hbm %s1932_s1, %s1211_s17 }
  0x39   : > { %s1715_s11 = scalar_select %p78_p11, %s1539_s28, %s80_s24  }
  0x3a   : > { %s323_s13 = scalar_lea.vmem [#allocation2], %s1210_s10  ;;  %p1727_p13 = pnand %p1344_p12, %p1700_p6 }
  0x3b   : > { %s334_s3 = sshll.u32 %s323_s13, 4  ;;  %s320_s24 = scalar_lea.sflag [#allocation3], %s319_s18  ;;  %s1723_s3 = int_to_ptr.vmem [resolvable:$true] %s334_s3 }
  0x3c   : > { %s1435_s20 = scalar_lea.hbm %s1721_s23, 64  ;;  %p1437_p3 = pneg %p1727_p13 }
  0x3d   : > { %p1436_p0 = scmp.ne.s32.totalorder %s1721_s23, %s1435_s20  ;;  %s1440_s21 = scalar_lea.hbm %s1932_s1, 128 }
  0x3e   : > { %p1441_p9 = scmp.lt.u32.totalorder %s1721_s23, %s1932_s1  ;;  %p1442_p1 = scmp.lt.u32.totalorder %s1440_s21, %s1435_s20 }
  0x3f   : > { %p1438_p5 = pnand %p1437_p3, %p1436_p0  ;;  %p1444_p4 = scmp.lt.u32.totalorder %s1435_s20, %s1721_s23 }
  0x40   : > { %p1443_p2 = por %p1442_p1, %p1441_p9 }
  0x41   : > { %p1439_p7 = pneg %p1438_p5 }
  0x42   : > { %p1445_p6 = por %p1444_p4, %p1443_p2 }
  0x44   : > { %p1446_p8 = pnand %p1445_p6, %p1439_p7 }
  0x46   : > { %1449 = shalt.err (!%p1446_p8)
}
  0x47   : > { %s1450_s18 = scalar_lea.vmem %s1723_s3, 64  ;;  %s1556_s13 = smov [#allocation2]  }
  0x48   : > { %p1451_p12 = scmp.ne.s32.totalorder %s1723_s3, %s1450_s18  ;;  %s1455_s10 = sshll.u32 %s1556_s13, 4  ;;  %s1456_s10 = int_to_ptr.vmem [resolvable:$false] %s1455_s10 }
  0x49   : > { %s1457_s17 = scalar_lea.vmem %s1456_s10, 128  ;;  %p1458_p5 = scmp.lt.s32.totalorder %s1723_s3, %s1456_s10 }
  0x4a   : > { %p1453_p11 = pnand %p1451_p12, %p1437_p3  ;;  %p1459_p9 = scmp.lt.s32.totalorder %s1457_s17, %s1450_s18 }
  0x4c   : > { %p1454_p0 = pneg %p1453_p11  ;;  %p1460_p1 = por %p1459_p9, %p1458_p5 }
  0x4e   : > { %p1461_p2 = pnand %p1460_p1, %p1454_p0 }
  0x50   : > { %1464 = shalt.err (!%p1461_p2)
}
  0x51   : > { %1338 = dma.hbm_to_vmem [thread:$0]  (!%p1727_p13), %s1721_s23, 64, %s1723_s3, %s320_s24  }
  0x52   : > { %p1958_p7 = scmp.ne.s32.totalorder %s1950_s16, 0 }
  0x53   : > { %s1759_s20 = sand.u32 (!%p1958_p7), 1, %s1535_s27   ;;  %p1959_p3 = scmp.ne.s32.totalorder (!%p1958_p7), %s1948_s14, 0 }
  0x54   : > { %359 = sbr.rel (%p1958_p7) target bundleno = 953 (0x3b9), region = 52  ;;  %s362_s21 = scalar_lea.sflag (!%p1958_p7), [#allocation3], %s1759_s20 }
  0x5b   : > { %1518 = dma.done.wait (%p1959_p3), %s362_s21, 64  }
  0x5c   : > { %1520 = vsyncadd (%p1959_p3), %s362_s21, 4294967232  ;;  %p1960_p4 = scmp.ne.s32.totalorder %s1946_s12, 0 }
  0x5e   : > { %1522 = dma.done.wait (%p1960_p4), [#allocation6], 96  }
  0x5f   : > { %1524 = vsyncadd (%p1960_p4), [#allocation6], 4294967200  ;;  %p419_p13 = scmp.lt.s32.totalorder %s1543_s29, 1  ;;  %v1557_v0 = vmov 0.0|0.0   ;;  %s1558_s3 = smov 1   ;;  %v1559_v1 = vmov 0.0   ;;  %v445_v34 = vlaneseq }
  0x60   : > { %556 = vrot.lane.b32.xlu0 %v1557_v0, %s1558_s3  ;;  %1263 = vmatprep.subr.bf16.mxu1 %v1559_v1  ;;  %vm1560_vm0 = vmmov 0   ;;  %vm464_vm1 = vcmask 1041408   ;;  %vm460_vm2 = vcmask 31744   ;;  %v511_v5 = vld [vmem:[#allocation5 + $0x4] sm:$0x3]  ;;  %v1561_v7 = vmov 0  }
  0x61   : > { %s420_s16 = scalar_select %p419_p13, %s1543_s29, 1  ;;  %1265 = vmatprep.mubr.msk.bf16.mxu1 %vm1560_vm0, %v1559_v1  ;;  %1257 = vmatprep.subr.bf16.mxu0 %v1559_v1  ;;  %v459_v6 = vld [vmem:[#allocation5] sm:$0x3]  ;;  %v509_v10 = vld [vmem:[#allocation5 + $0x2] sm:$0x3]  ;;  %v1824_v35 = vand.u32 127, %v445_v34 }
  0x62   : > { %1259 = vmatprep.mubr.msk.bf16.mxu0 %vm1560_vm0, %v1559_v1  ;;  %1406 = vset.pattern.permute.xlu1 %v1561_v7  ;;  %v708_v21 = vld [vmem:[%s1936_s5] sm:$0xf]  ;;  %s1562_s22 = smov 2   ;;  %s1563_s18 = smov 127   ;;  %vm730_vm4 = vcmask 7168   ;;  %vm746_vm6 = vcmask 1043456  }
  0x63   : > { %s1216_s12 = sshll.u32 %s420_s16, 2  ;;  %1405 = vset.pattern.permute.xlu0 %v1561_v7  ;;  %vm447_vm3 = vcmp.eq.s32.totalorder %v1824_v35, 0  ;;  %vm448_vm5 = vcmp.eq.s32.totalorder %v1824_v35, 127  ;;  %vm754_vm7 = vcmask 1045504   ;;  %vm721_vm9 = vcmp.lt.s32.totalorder %v1824_v35, 16  ;;  %s1215_s25 = sshll.u32 %s1759_s20, 2 }
  0x64   : > { %s425_s19 = scalar_lea.vmem %s1931_s0, %s1216_s12  ;;  %v749_v57 = vld [vmem:[%s1935_s4] sm:$0x3]  ;;  %vm750_vm10 = vcmask 97280   ;;  %v1226_v63 = vld [vmem:[%s1937_s6 + $0x4] sm:$0x3]  ;;  %s1071_s21 = scalar_lea.sflag [#allocation4], %s1759_s20 }
  0x65   : > { %v1783_v2 = vld [vmem:[%s425_s19] sm:$0xf] }
  0x66   : > { %v1787_v3 = vpack.c.bf16 %v1783_v2, %v1783_v2  ;;  %v818_v61 = vld [vmem:[%s1937_s6] sm:$0x3] }
  0x68   : > { %v466_v4 = vsel %vm464_vm1, %v1787_v3, 0  ;;  %v739_v40 = vsel %vm730_vm4, %v1787_v3, 0.0|0.0 }
  0x69   : > { %1264 = vmatpush3.bf16.msra.mxu1 %v466_v4  ;;  %1258 = vmatpush3.bf16.msra.mxu0 %v466_v4  ;;  %v743_v47 = vrot.slane %v739_v40, 4 }
  0x6a   : > { %1275 = vmatprep.subr.bf16.mxu1 %v1559_v1  ;;  %1269 = vmatprep.subr.bf16.mxu0 %v1559_v1 }
  0x6c   : > { %1266 = vmatmul.mubr.msk.bf16.vlgmr.msra.gmra.mrb[0].mxu1 %vm460_vm2, %v511_v5  ;;  %1260 = vmatmul.mubr.msk.bf16.vlgmr.msra.gmra.mrb[0].mxu0 %vm460_vm2, %v459_v6 }
  0x6d   : > { %1276 = vmatpush3.bf16.msra.mxu1 %v1557_v0  ;;  %1277 = vmatprep.mubr.msk.bf16.mxu1 %vm1560_vm0, %v1559_v1 }
  0x6e   : > { %1271 = vmatprep.mubr.msk.bf16.mxu0 %vm1560_vm0, %v1559_v1  ;;  %1287 = vmatprep.subr.bf16.mxu1 %v1559_v1 }
  0x74   : > { %1278 = vmatmul.mubr.msk.bf16.vlgmr.msra.gmra.mrb[4].mxu1 %vm460_vm2, %v511_v5 }
  0x75   : > { %1289 = vmatprep.mubr.msk.bf16.mxu1 %vm1560_vm0, %v1559_v1 }
  0xd2   : > { %v557_v8 = vpop.permute.xlu0 %556 }
  0xd3   : > { %v559_v9 = vsel %vm464_vm1, %v557_v8, 0 }
  0xd4   : > { %1270 = vmatpush3.bf16.msra.mxu0 %v559_v9 }
  0xd5   : > { %1281 = vmatprep.subr.bf16.mxu0 %v1559_v1 }
  0xd7   : > { %1272 = vmatmul.mubr.msk.bf16.vlgmr.msra.gmra.mrb[4].mxu0 %vm460_vm2, %v459_v6 }
  0xd8   : > { %1282 = vmatpush3.bf16.msra.mxu0 %v466_v4  ;;  %1283 = vmatprep.mubr.msk.bf16.mxu0 %vm1560_vm0, %v1559_v1 }
  0xd9   : > { %1293 = vmatprep.subr.bf16.mxu0 %v1559_v1 }
  0xdf   : > { %1284 = vmatmul.mubr.msk.bf16.vlgmr.msra.gmra.mrb[8].mxu0 %vm460_vm2, %v509_v10 }
  0xe0   : > { %1295 = vmatprep.mubr.msk.bf16.mxu0 %vm1560_vm0, %v1559_v1 }
 0x13f   : > { %v549_v11 = vpop.f32.mrb[0].mxu1  ;;  %v502_v12 = vpop.f32.mrb[0].mxu0 }
 0x140   : > { %v1267_v13 = vpop.f32.mrb[1].mxu1  ;;  %v1261_v14 = vpop.f32.mrb[1].mxu0 }
 0x141   : > { %v552_v15 = vpop.f32.mrb[2].mxu1  ;;  %v505_v16 = vpop.f32.mrb[2].mxu0 }
 0x142   : > { %v1268_v17 = vpop.f32.mrb[3].mxu1  ;;  %v1262_v18 = vpop.f32.mrb[3].mxu0 }
 0x143   : > { %v1061_v17 = vld [vmem:[%s1938_s7] sm:$0xf] }
 0x147   : > { %v638_v19 = vpop.f32.mrb[4].mxu1 }
 0x148   : > { %660 = vperm.xlu1 %1406, %v638_v19   ;;  %v1279_v20 = vpop.f32.mrb[5].mxu1 }
 0x149   : > { %v641_v22 = vpop.f32.mrb[6].mxu1 }
 0x14a   : > { %v1280_v23 = vpop.f32.mrb[7].mxu1 }
 0x14c   : > { %711 = vperm.xlu1 %1406, %v708_v21  }
 0x150   : > { %644 = vrot.lane.b32.xlu1 %v502_v12, %s1558_s3 }
 0x154   : > { %735 = vrot.lane.b32.xlu1 %v1557_v0, %s1558_s3 }
 0x158   : > { %728 = vrot.lane.b32.xlu1 %v1787_v3, %s1562_s22 }
 0x1aa   : > { %v595_v24 = vpop.f32.mrb[4].mxu0 }
 0x1ab   : > { %650 = vperm.xlu0 %1405, %v595_v24   ;;  %v1273_v25 = vpop.f32.mrb[5].mxu0 }
 0x1ac   : > { %v598_v26 = vpop.f32.mrb[6].mxu0 }
 0x1ad   : > { %v1274_v27 = vpop.f32.mrb[7].mxu0 }
 0x1af   : > { %654 = vrot.lane.b32.xlu0 %v549_v11, %s1563_s18 }
 0x1b2   : > { %v701_v28 = vpop.f32.mrb[8].mxu0 }
 0x1b3   : > { %725 = vrot.lane.b32.xlu0 %v1557_v0, %s1562_s22  ;;  %v1285_v29 = vpop.f32.mrb[9].mxu0  ;;  %s418_s22 = scalar_lea.vmem [#allocation7], %s1215_s25 }
 0x1b4   : > { %v704_v30 = vpop.f32.mrb[10].mxu0 }
 0x1b5   : > { %v1286_v31 = vpop.f32.mrb[11].mxu0 }
 0x1b7   : > { %956 = vrot.lane.b32.xlu0 %v1557_v0, %s1563_s18 }
 0x1c7   : > { %v661_v32 = vpop.permute.xlu1 %660 }
 0x1cb   : > { %v712_v33 = vpop.permute.xlu1 %711 }
 0x1cf   : > { %v645_v36 = vpop.permute.xlu1 %644 }
 0x1d3   : > { %v736_v39 = vpop.permute.xlu1 %735 }
 0x1d4   : > { %v738_v43 = vsel %vm730_vm4, %v557_v8, %v736_v39 }
 0x1d5   : > { %v741_v48 = vrot.slane %v738_v43, 6 }
 0x1d7   : > { %v729_v46 = vpop.permute.xlu1 %728 }
 0x22a   : > { %v651_v37 = vpop.permute.xlu0 %650 }
 0x22b   : > { %v653_v38 = vsel %vm447_vm3, %v651_v37, %v645_v36 }
 0x22c   : > { %v702_v41 = vadd.f32 %v701_v28, %v653_v38 }
 0x22e   : > { %v655_v42 = vpop.permute.xlu0 %654 }
 0x22f   : > { %v663_v44 = vsel %vm448_vm5, %v661_v32, %v655_v42 }
 0x230   : > { %v707_v45 = vadd.f32 %v702_v41, %v663_v44 }
 0x232   : > { %v714_v49 = vadd.f32 %v712_v33, %v707_v45  ;;  %v726_v50 = vpop.permute.xlu0 %725 }
 0x233   : > { %v733_v51 = vsel %vm730_vm4, %v726_v50, %v729_v46 }
 0x234   : > { %v716_v52 = vmul.f32 0.2, %v714_v49  ;;  %v745_v53 = vsel %vm464_vm1, %v733_v51, %v741_v48  ;;  %vm715_vm8 = vcmp.gt.f32.partialorder %v714_v49, 0.0 }
 0x235   : > { %v748_v54 = vsel %vm746_vm6, %v745_v53, %v743_v47 }
 0x236   : > { %v755_v55 = vsel %vm754_vm7, %v748_v54, 0  ;;  %v717_v56 = vsel %vm715_vm8, %v714_v49, %v716_v52  ;;  %v957_v62 = vpop.permute.xlu0 %956 }
 0x237   : > { %1288 = vmatpush3.bf16.msra.mxu1 %v755_v55  ;;  %v724_v58 = vsel %vm721_vm9, %v717_v56, 0.0  ;;  %v959_v3 = vsel %vm464_vm1, %v957_v62, 0 }
 0x238   : > { %1299 = vmatprep.subr.bf16.mxu1 %v1559_v1  ;;  %v815_v59 = vpack.c.bf16 %v724_v58, %v724_v58 }
 0x23a   : > { %1290 = vmatmul.mubr.msk.bf16.vlgmr.msra.gmra.mrb[8].mxu1 %vm750_vm10, %v749_v57  ;;  %v823_v60 = vsel %vm464_vm1, %v815_v59, 0 }
 0x23b   : > { %1294 = vmatpush3.bf16.msra.mxu0 %v823_v60  ;;  %1300 = vmatpush3.bf16.msra.mxu1 %v823_v60 }
 0x23c   : > { %1301 = vmatprep.mubr.msk.bf16.mxu1 %vm1560_vm0, %v1559_v1  ;;  %1305 = vmatprep.subr.bf16.mxu0 %v1559_v1 }
 0x23d   : > { %1311 = vmatprep.subr.bf16.mxu1 %v1559_v1 }
 0x23e   : > { %1296 = vmatmul.mubr.msk.bf16.vlgmr.msra.gmra.mrb[12].mxu0 %vm460_vm2, %v818_v61 }
 0x23f   : > { %1306 = vmatpush3.bf16.msra.mxu0 %v1557_v0  ;;  %1307 = vmatprep.mubr.msk.bf16.mxu0 %vm1560_vm0, %v1559_v1  ;;  %v1225_v0 = vld [vmem:[%s1937_s6 + $0x2] sm:$0x3] }
 0x240   : > { %1317 = vmatprep.subr.bf16.mxu0 %v1559_v1 }
 0x242   : > { %1302 = vmatmul.mubr.msk.bf16.vlgmr.msra.gmra.mrb[12].mxu1 %vm460_vm2, %v1226_v63 }
 0x243   : > { %1312 = vmatpush3.bf16.msra.mxu1 %v959_v3  ;;  %1313 = vmatprep.mubr.msk.bf16.mxu1 %vm1560_vm0, %v1559_v1 }
 0x246   : > { %1308 = vmatmul.mubr.msk.bf16.vlgmr.msra.gmra.mrb[16].mxu0 %vm460_vm2, %v818_v61 }
 0x247   : > { %1318 = vmatpush3.bf16.msra.mxu0 %v823_v60  ;;  %1319 = vmatprep.mubr.msk.bf16.mxu0 %vm1560_vm0, %v1559_v1 }
 0x24a   : > { %1314 = vmatmul.mubr.msk.bf16.vlgmr.msra.gmra.mrb[16].mxu1 %vm460_vm2, %v1226_v63 }
 0x24e   : > { %1320 = vmatmul.mubr.msk.bf16.vlgmr.msra.gmra.mrb[20].mxu0 %vm460_vm2, %v1225_v0 }
 0x30d   : > { %v791_v4 = vpop.f32.mrb[8].mxu1 }
 0x30e   : > { %v1291_v5 = vpop.f32.mrb[9].mxu1 }
 0x30f   : > { %v794_v6 = vpop.f32.mrb[10].mxu1 }
 0x310   : > { %v1292_v7 = vpop.f32.mrb[11].mxu1 }
 0x311   : > { %v859_v8 = vpop.f32.mrb[12].mxu0 }
 0x312   : > { %v1297_v9 = vpop.f32.mrb[13].mxu0 }
 0x313   : > { %v862_v10 = vpop.f32.mrb[14].mxu0 }
 0x314   : > { %v1298_v11 = vpop.f32.mrb[15].mxu0 }
 0x315   : > { %v906_v12 = vpop.f32.mrb[12].mxu1 }
 0x316   : > { %v1303_v13 = vpop.f32.mrb[13].mxu1 }
 0x317   : > { %v909_v14 = vpop.f32.mrb[14].mxu1 }
 0x318   : > { %v1304_v1 = vpop.f32.mrb[15].mxu1 }
 0x319   : > { %v949_v15 = vpop.f32.mrb[16].mxu0 }
 0x31a   : > { %1005 = vperm.xlu1 %1406, %v949_v15   ;;  %v1309_v16 = vpop.f32.mrb[17].mxu0 }
 0x31b   : > { %v952_v18 = vpop.f32.mrb[18].mxu0 }
 0x31c   : > { %v1310_v19 = vpop.f32.mrb[19].mxu0 }
 0x31d   : > { %v995_v20 = vpop.f32.mrb[16].mxu1 }
 0x31e   : > { %1013 = vperm.xlu0 %1405, %v995_v20   ;;  %1064 = vperm.xlu1 %1406, %v1061_v17   ;;  %v1315_v21 = vpop.f32.mrb[17].mxu1 }
 0x31f   : > { %v998_v22 = vpop.f32.mrb[18].mxu1 }
 0x320   : > { %v1316_v23 = vpop.f32.mrb[19].mxu1 }
 0x321   : > { %v1054_v24 = vpop.f32.mrb[20].mxu0 }
 0x322   : > { %1001 = vrot.lane.b32.xlu0 %v859_v8, %s1558_s3  ;;  %1009 = vrot.lane.b32.xlu1 %v906_v12, %s1563_s18  ;;  %v1321_v25 = vpop.f32.mrb[21].mxu0  ;;  %s1232_s3 = sshll.u32 %s1543_s29, 6  ;;  %s1085_s18 = sshll.u32 %s418_s22, 4  ;;  %s1884_s18 = int_to_ptr.vmem [resolvable:$true] %s1085_s18 }
 0x323   : > { %v1057_v26 = vpop.f32.mrb[22].mxu0  ;;  %s1882_s17 = scalar_lea.hbm %s1939_s8, %s1232_s3  ;;  %s1465_s16 = scalar_lea.vmem %s1884_s18, 64 }
 0x324   : > { %v1322_v27 = vpop.f32.mrb[23].mxu0  ;;  %p1466_p6 = scmp.ne.s32.totalorder %s1884_s18, %s1465_s16  ;;  %s1564_s29 = smov [#allocation7]  }
 0x325   : > { %s1469_s12 = sshll.u32 %s1564_s29, 4  ;;  %s1470_s12 = int_to_ptr.vmem [resolvable:$false] %s1469_s12 }
 0x326   : > { %p1467_p8 = pnand %p1466_p6, %p1706_p10  ;;  %s1471_s14 = scalar_lea.vmem %s1470_s12, 128 }
 0x327   : > { %p1472_p11 = scmp.lt.s32.totalorder %s1884_s18, %s1470_s12  ;;  %p1473_p0 = scmp.lt.s32.totalorder %s1471_s14, %s1465_s16 }
 0x328   : > { %p1468_p12 = pneg %p1467_p8 }
 0x329   : > { %p1474_p5 = por %p1473_p0, %p1472_p11 }
 0x32b   : > { %p1475_p9 = pnand %p1474_p5, %p1468_p12 }
 0x399   : > { %v1006_v28 = vpop.permute.xlu1 %1005 }
 0x39d   : > { %v1014_v29 = vpop.permute.xlu0 %1013  ;;  %v1065_v30 = vpop.permute.xlu1 %1064 }
 0x3a1   : > { %v1002_v31 = vpop.permute.xlu0 %1001  ;;  %v1010_v32 = vpop.permute.xlu1 %1009 }
 0x3a2   : > { %v1008_v33 = vsel %vm447_vm3, %v1006_v28, %v1002_v31  ;;  %v1016_v36 = vsel %vm448_vm5, %v1014_v29, %v1010_v32 }
 0x3a3   : > { %v1055_v34 = vadd.f32 %v1054_v24, %v1008_v33 }
 0x3a5   : > { %v1060_v37 = vadd.f32 %v1055_v34, %v1016_v36 }
 0x3a7   : > { %v1067_v38 = vadd.f32 %v1065_v30, %v1060_v37 }
 0x3a9   : > { %v1068_v39 = vadd.f32 %v1067_v38, %v1783_v2 }
 0x3ab   : > { %1069 = vst [vmem:[%s418_s22] sm:$0xf] %v1068_v39 }
 0x3ac   : > { %1478 = shalt.err (!%p1475_p9)
}
 0x3ad   : > { %s1479_s20 = scalar_lea.hbm %s1882_s17, 64  ;;  %s1483_s24 = scalar_lea.hbm %s1939_s8, 128 }
 0x3ae   : > { %p1480_p1 = scmp.ne.s32.totalorder %s1882_s17, %s1479_s20  ;;  %p1484_p3 = scmp.lt.u32.totalorder %s1882_s17, %s1939_s8 }
 0x3af   : > { %p1485_p4 = scmp.lt.u32.totalorder %s1483_s24, %s1479_s20  ;;  %p1487_p6 = scmp.lt.u32.totalorder %s1479_s20, %s1882_s17 }
 0x3b0   : > { %p1481_p2 = pnand %p1480_p1, %p1706_p10 }
 0x3b1   : > { %p1486_p13 = por %p1485_p4, %p1484_p3 }
 0x3b2   : > { %p1482_p7 = pneg %p1481_p2 }
 0x3b3   : > { %p1488_p8 = por %p1487_p6, %p1486_p13 }
 0x3b5   : > { %p1489_p12 = pnand %p1488_p8, %p1482_p7 }
 0x3b7   : > { %1492 = shalt.err (!%p1489_p12)
}
 0x3b8   : > { %1329 = dma.vmem_to_hbm [thread:$0]  (%p1706_p10), %s1884_s18, 64, %s1882_s17, %s1071_s21  }
 0x3b9 PF: > { %s1097_s22 = sand.u32 1, %s1531_s2   ;;  %p1961_p11 = scmp.ne.s32.totalorder %s1949_s15, 0 }
 0x3ba   : > { %p1962_p0 = scmp.ge.s32.totalorder %s1551_s9, 2  ;;  %s1098_s13 = scalar_lea.sflag [#allocation4], %s1097_s22 }
 0x3bc   : > { %p1340_p5 = pnand %p1962_p0, %p1961_p11 }
 0x3be   : > { %1526 = dma.done.wait (!%p1340_p5), %s1098_s13, 64  }
 0x3bf   : > { %1528 = vsyncadd (!%p1340_p5), %s1098_s13, 4294967232  ;;  %s25_s9 = sadd.s32 1, %s1551_s9   ;;  %s1963_s26 = sld [smem:[#allocation11_spill]] }
 0x3c0   : > { %p22_p9 = scmp.ge.s32.totalorder %s25_s9, 4   ;;  %s1964_s2 = smov %s1535_s27 }
 0x3c1   : > { %s1965_s27 = smov %s1539_s28  ;;  %s1966_s28 = smov %s1715_s11 }
 0x3c2   : > { %s1967_s29 = smov %s1547_s30  ;;  %24 = sbr.rel (!%p22_p9) target bundleno = 9 (0x9), region = 111 }
 0x3c5   : > { %s1968_s30 = smov %s1963_s26 }
 0x3c9   :  { %1103 = vsyncpa [#allocation3], 1 }
 0x3ca   :  { %1105 = vsyncpa [#allocation3 + $0x1], 1 }
 0x3cb   :  { %1106 = vsyncpa [#allocation6], 1 }
 0x3cc   :  { %1107 = vsyncpa [#allocation4], 1 }
 0x3cd   :  { %1109 = vsyncpa [#allocation4 + $0x1], 1 }

</bundles_post_ra>
